<compile_context>
chip_gen: v5e
topology: v5e:2x2
jax: 0.10.0
libtpu: 0.0.40
codegen_flags: <defaults>
</compile_context>

<pallas_src>
import functools
import math

import jax
import jax.numpy as jnp
from jax.experimental import pallas as pl
from jax.experimental.pallas import tpu as pltpu


BN_EPS = 1e-5
BN_INV = 1.0 / math.sqrt(1.0 + BN_EPS)  # eval-mode BatchNorm with fresh running stats


def _round_up(x, m):
    return (x + m - 1) // m * m


# ------------------------------ Pallas kernels ---------------------------------

def _branch_kernel(a_ref, x_ref, p_ref, w10_ref, b10_ref, w20_ref, b20_ref,
                   w1r_ref, b1r_ref, w2r_ref, b2r_ref, wa_ref, part_ref,
                   *, num_layers):
    """One grid step == one full GIN branch (all layers + pooling) plus its
    per-branch contribution to the head's first Linear (pooled_k @ wa_k).

    Correctness invariant: padded COLUMNS of A (j >= num_nodes) and of P must be
    zero, because padded node rows of h accumulate relu(bias) garbage across layers;
    zero columns guarantee that garbage never leaks into real rows / pooled features.
    """
    f32 = jnp.float32
    bf16 = jnp.bfloat16

    a = a_ref[0]          # (N_pad, N_pad)  bf16 dense (A + I) operator
    h = x_ref[0]          # (N_pad, F_pad)  bf16 node features

    def gin_layer(h_bf16, w1, b1, w2, b2):
        # GIN aggregation (eps = 0):  (A + I) @ h      (bf16 MXU, f32 accumulation)
        z = jnp.dot(a, h_bf16, preferred_element_type=f32)
        # MLP Lin1 (eval BatchNorm scale pre-folded into w1/b1) -> ReLU
        z = jnp.dot(z.astype(bf16), w1, preferred_element_type=f32) + b1
        z = jnp.maximum(z, 0.0)
        # MLP Lin2 -> outer .relu()
        o = jnp.dot(z.astype(bf16), w2, preferred_element_type=f32) + b2
        return jnp.maximum(o, 0.0).astype(bf16)

    # Layer 0 has its own (F_pad, H_pad) Lin1 (decoupled feature/hidden padding).
    h = gin_layer(h, w10_ref[0], b10_ref[0], w20_ref[0], b20_ref[0])

    # Remaining layers.  num_layers is small & static -> Python unroll.
    # TODO(synk): switch to lax.fori_loop(..., unroll=True) with dynamic
    #             w1r_ref[0, l] indexing if num_layers ever grows beyond ~4.
    for l in range(num_layers - 1):
        h = gin_layer(h, w1r_ref[0, l], b1r_ref[0, l], w2r_ref[0, l], b2r_ref[0, l])

    # global_add_pool as dense matmul:  P @ h  (padded nodes/graphs contribute zero)
    pooled = jnp.dot(p_ref[0], h, preferred_element_type=f32)          # (G_pad, H_pad)

    # Per-branch block of the head's first Linear; branches summed in _head_kernel.
    part_ref[0] = jnp.dot(pooled.astype(bf16), wa_ref[0], preferred_element_type=f32)


def _head_kernel(part_ref, ba_ref, wb_ref, bb_ref, o_ref):
    """sum_k(pooled_k @ wa_k) + ba -> ReLU -> (eval dropout = identity) -> Lin_b."""
    z = jnp.sum(part_ref[...], axis=0) + ba_ref[...]        # (G_pad, H_pad) f32
    z = jnp.maximum(z, 0.0)
    o_ref[...] = (jnp.dot(z.astype(jnp.bfloat16), wb_ref[...],
                          preferred_element_type=jnp.float32) + bb_ref[...])


def _vmem_limit_bytes():
    """~12.5% headroom under physical VMEM (v5e/v6e: 128 MiB -> 112 MiB,
    v7x: 64 MiB -> 56 MiB).  Conservative 48 MiB if the query is unavailable."""
    try:
        cap = int(pltpu.get_tpu_info().vmem_capacity_bytes)
        return (cap // 8) * 7
    except Exception:
        return 48 * 1024 * 1024


def lagin_pallas(ops, *, concat, num_layers):
    (a, x, p, w10, b10, w20, b20, w1r, b1r, w2r, b2r, was, ba, wb, bb) = ops
    _, n_pad, _ = a.shape
    f_pad = x.shape[-1]
    h_pad = was.shape[-1]
    g_pad = p.shape[1]
    out_pad = wb.shape[-1]
    lr = w1r.shape[1]

    # Advisory cost estimate (bf16 operand bytes, f32 partial output).
    flops_branch = (2 * n_pad * n_pad * f_pad + 2 * n_pad * f_pad * h_pad
                    + 2 * n_pad * h_pad * h_pad
                    + (num_layers - 1) * (2 * n_pad * n_pad * h_pad
                                          + 4 * n_pad * h_pad * h_pad)
                    + 2 * g_pad * n_pad * h_pad + 2 * g_pad * h_pad * h_pad)
    branch_ops = (a, x, p, w10, b10, w20, b20, w1r, b1r, w2r, b2r, was)
    bytes_branch = (sum(int(t.size) * t.dtype.itemsize for t in branch_ops)
                    + concat * g_pad * h_pad * 4)

    def branch_call(single_buffer):
        # Single-buffer the big per-branch operands so the N^2 A operator (and X, P)
        # is not double-buffered -- key for v7x's 64 MiB VMEM.
        big = {"pipeline_mode": pl.Buffered(1)} if single_buffer else {}
        in_specs = [
            pl.BlockSpec((1, n_pad, n_pad), lambda k: (k, 0, 0), **big),      # A + I
            pl.BlockSpec((1, n_pad, f_pad), lambda k: (k, 0, 0), **big),      # X
            pl.BlockSpec((1, g_pad, n_pad), lambda k: (k, 0, 0), **big),      # pool P
            pl.BlockSpec((1, f_pad, h_pad), lambda k: (k, 0, 0)),             # w1 layer0
            pl.BlockSpec((1, 1, h_pad), lambda k: (k, 0, 0)),                 # b1 layer0
            pl.BlockSpec((1, h_pad, h_pad), lambda k: (k, 0, 0)),             # w2 layer0
            pl.BlockSpec((1, 1, h_pad), lambda k: (k, 0, 0)),                 # b2 layer0
            pl.BlockSpec((1, lr, h_pad, h_pad), lambda k: (k, 0, 0, 0)),      # w1 rest
            pl.BlockSpec((1, lr, 1, h_pad), lambda k: (k, 0, 0, 0)),          # b1 rest
            pl.BlockSpec((1, lr, h_pad, h_pad), lambda k: (k, 0, 0, 0)),      # w2 rest
            pl.BlockSpec((1, lr, 1, h_pad), lambda k: (k, 0, 0, 0)),          # b2 rest
            pl.BlockSpec((1, h_pad, h_pad), lambda k: (k, 0, 0)),             # wa (branch)
        ]
        return pl.pallas_call(
            functools.partial(_branch_kernel, num_layers=num_layers),
            out_shape=jax.ShapeDtypeStruct((concat, g_pad, h_pad), jnp.float32),
            grid=(concat,),
            in_specs=in_specs,
            out_specs=pl.BlockSpec((1, g_pad, h_pad), lambda k: (k, 0, 0)),
            compiler_params=pltpu.CompilerParams(
                dimension_semantics=("parallel",),     # branches are independent
                vmem_limit_bytes=_vmem_limit_bytes()),
            cost_estimate=pl.CostEstimate(flops=int(concat * flops_branch),
                                          transcendentals=0,
                                          bytes_accessed=int(bytes_branch)),
        )(a, x, p, w10, b10, w20, b20, w1r, b1r, w2r, b2r, was)

    try:
        partials = branch_call(single_buffer=True)
    except Exception:
        # Fallback if this jax version rejects pl.Buffered(1) pipeline_mode.
        partials = branch_call(single_buffer=False)

    return pl.pallas_call(
        _head_kernel,
        out_shape=jax.ShapeDtypeStruct((g_pad, out_pad), jnp.float32),
        grid=(1,),
        in_specs=[
            pl.BlockSpec((concat, g_pad, h_pad), lambda i: (0, 0, 0)),
            pl.BlockSpec((1, h_pad), lambda i: (0, 0)),
            pl.BlockSpec((h_pad, out_pad), lambda i: (0, 0)),
            pl.BlockSpec((1, out_pad), lambda i: (0, 0)),
        ],
        out_specs=pl.BlockSpec((g_pad, out_pad), lambda i: (0, 0)),
        compiler_params=pltpu.CompilerParams(dimension_semantics=("arbitrary",)),
    )(partials, ba, wb, bb)


# --------------------------- parameter construction ---------------------------

def _init_linear(key, fan_in, fan_out):
    kw, kb = jax.random.split(key)
    bound = 1.0 / math.sqrt(fan_in)
    w = jax.random.uniform(kw, (fan_in, fan_out), jnp.float32, -bound, bound)
    b = jax.random.uniform(kb, (fan_out,), jnp.float32, -bound, bound)
    return w, b


def init_lagin_params(key, concat, nfeat, nhid, out_ch, num_layers):
    params = {"branches": [], "head": None}
    for _ in range(concat):
        layers = []
        f_in = nfeat
        for _ in range(num_layers):
            key, k1, k2 = jax.random.split(key, 3)
            w1, b1 = _init_linear(k1, f_in, nhid)   # GIN MLP Lin1
            w2, b2 = _init_linear(k2, nhid, nhid)   # GIN MLP Lin2 (plain last)
            layers.append((w1, b1, w2, b2))
            f_in = nhid
        params["branches"].append(layers)
    key, ka, kb = jax.random.split(key, 3)
    wa, ba = _init_linear(ka, nhid * concat, nhid)  # head Lin1
    wb, bb = _init_linear(kb, nhid, out_ch)         # head Lin2
    params["head"] = (wa, ba, wb, bb)
    return params


# ------------------------- operand preparation (glue) --------------------------

def _pad_to(v, shape, dtype=jnp.float32):
    out = jnp.zeros(shape, jnp.float32)
    out = out.at[tuple(slice(0, s) for s in v.shape)].set(v.astype(jnp.float32))
    return out.astype(dtype)


def prepare_lagin_operands(params, graphs, *, nfeat, nhid, out_ch, num_layers):
    """One-time conversion: graphs -> dense padded bf16 operators,
    params -> stacked padded weight slabs (bf16 weights, f32 biases)."""
    concat = len(graphs)
    n = graphs[0][0].shape[0]
    num_graphs = graphs[0][3]
    for (xg, _, _, g) in graphs:
        assert xg.shape[0] == n and g == num_graphs, "branches must share node/graph counts"

    f_pad = _round_up(nfeat, 128)     # input-feature lanes (decoupled from hidden)
    h_pad = _round_up(nhid, 128)      # hidden lanes
    n_pad = _round_up(n, 8)           # sublane-aligned node count
    g_pad = _round_up(num_graphs, 8)
    out_pad = _round_up(out_ch, 128)

    node_ids = jnp.arange(n_pad)
    a_list, x_list, p_list = [], [], []
    for (x, edge_index, batch, _) in graphs:
        src, dst = edge_index[0], edge_index[1]
        # Dense (A + I): small-integer entries -> exact in bf16.
        # Invariant: padded COLUMNS (j >= n) of A and P must stay zero (see kernel).
        a = jnp.zeros((n_pad, n_pad), jnp.float32).at[dst, src].add(1.0)
        a = a + jnp.diag((node_ids < n).astype(jnp.float32))       # + I on real nodes only
        a_list.append(a.astype(jnp.bfloat16))
        x_list.append(_pad_to(x, (n_pad, f_pad), jnp.bfloat16))
        batch_pad = jnp.full((n_pad,), -1, jnp.int32).at[:n].set(batch.astype(jnp.int32))
        p = (batch_pad[None, :] == jnp.arange(g_pad)[:, None]).astype(jnp.float32)
        p_list.append(p.astype(jnp.bfloat16))

    lr = max(num_layers - 1, 1)       # >=1 so slab shapes stay valid when num_layers==1
    w10 = jnp.zeros((concat, f_pad, h_pad), jnp.float32)
    b10 = jnp.zeros((concat, 1, h_pad), jnp.float32)
    w20 = jnp.zeros((concat, h_pad, h_pad), jnp.float32)
    b20 = jnp.zeros((concat, 1, h_pad), jnp.float32)
    w1r = jnp.zeros((concat, lr, h_pad, h_pad), jnp.float32)
    b1r = jnp.zeros((concat, lr, 1, h_pad), jnp.float32)
    w2r = jnp.zeros((concat, lr, h_pad, h_pad), jnp.float32)
    b2r = jnp.zeros((concat, lr, 1, h_pad), jnp.float32)
    for k in range(concat):
        for l, (w1, b1, w2, b2) in enumerate(params["branches"][k]):
            # Fold eval-mode BatchNorm (fresh stats: mean=0, var=1, affine id) into Lin1.
            # For a trained checkpoint fold gamma/sqrt(running_var+eps) and
            # beta - gamma*mean/sqrt(var+eps) here instead.
            w1f, b1f = w1 * BN_INV, b1 * BN_INV
            if l == 0:
                w10 = w10.at[k, :w1.shape[0], :w1.shape[1]].set(w1f)
                b10 = b10.at[k, 0, :b1.shape[0]].set(b1f)
                w20 = w20.at[k, :w2.shape[0], :w2.shape[1]].set(w2)
                b20 = b20.at[k, 0, :b2.shape[0]].set(b2)
            else:
                w1r = w1r.at[k, l - 1, :w1.shape[0], :w1.shape[1]].set(w1f)
                b1r = b1r.at[k, l - 1, 0, :b1.shape[0]].set(b1f)
                w2r = w2r.at[k, l - 1, :w2.shape[0], :w2.shape[1]].set(w2)
                b2r = b2r.at[k, l - 1, 0, :b2.shape[0]].set(b2)

    wa, ba, wb, bb = params["head"]
    was = jnp.zeros((concat, h_pad, h_pad), jnp.float32)
    for k in range(concat):
        was = was.at[k, :nhid, :nhid].set(wa[k * nhid:(k + 1) * nhid, :])

    ops = (jnp.stack(a_list), jnp.stack(x_list), jnp.stack(p_list),
           w10.astype(jnp.bfloat16), b10, w20.astype(jnp.bfloat16), b20,
           w1r.astype(jnp.bfloat16), b1r, w2r.astype(jnp.bfloat16), b2r,
           was.astype(jnp.bfloat16),
           _pad_to(ba.reshape(1, -1), (1, h_pad)),
           _pad_to(wb, (h_pad, out_pad), jnp.bfloat16),
           _pad_to(bb.reshape(1, -1), (1, out_pad)))
    meta = dict(concat=concat, num_layers=num_layers,
                num_graphs=num_graphs, out_ch=out_ch)
    return ops, meta


def lagin_forward(params, graphs, *, nfeat, nhid, out_ch, num_layers):
    ops, meta = prepare_lagin_operands(params, graphs, nfeat=nfeat, nhid=nhid,
                                       out_ch=out_ch, num_layers=num_layers)
    out_pad = lagin_pallas(ops, concat=meta["concat"], num_layers=meta["num_layers"])
    return out_pad[:meta["num_graphs"], :meta["out_ch"]]


# ------------------------------ pure-JAX reference -----------------------------

def lagin_reference(params, graphs):
    hidden = []
    hi = jax.lax.Precision.HIGHEST
    for k, (x, edge_index, batch, num_graphs) in enumerate(graphs):
        n = x.shape[0]
        src, dst = edge_index[0], edge_index[1]
        a = jnp.zeros((n, n), jnp.float32).at[dst, src].add(1.0) + jnp.eye(n, dtype=jnp.float32)
        pool = (batch[None, :] == jnp.arange(num_graphs)[:, None]).astype(jnp.float32)
        h = x.astype(jnp.float32)
        for (w1, b1, w2, b2) in params["branches"][k]:
            z = jnp.dot(a, h, precision=hi)
            z = jnp.maximum((jnp.dot(z, w1, precision=hi) + b1) * BN_INV, 0.0)
            h = jnp.maximum(jnp.dot(z, w2, precision=hi) + b2, 0.0)
        hidden.append(jnp.dot(pool, h, precision=hi))
    xc = jnp.concatenate(hidden, axis=-1)
    wa, ba, wb, bb = params["head"]
    z = jnp.maximum(jnp.dot(xc, wa, precision=hi) + ba, 0.0)
    return jnp.dot(z, wb, precision=hi) + bb


# ----------------------------------- main --------------------------------------

if __name__ == "__main__":
    concat, nfeat, nhid, out_ch, num_layers = 2, 16, 32, 8, 2
    num_nodes, num_edges, num_graphs = 32, 64, 2

    key = jax.random.PRNGKey(0)
    key, pkey = jax.random.split(key)
    params = init_lagin_params(pkey, concat, nfeat, nhid, out_ch, num_layers)

    graphs = []
    for _ in range(concat):
        key, kx, ke = jax.random.split(key, 3)
        x = jax.random.normal(kx, (num_nodes, nfeat), jnp.float32)
        edge_index = jax.random.randint(ke, (2, num_edges), 0, num_nodes, jnp.int32)
        batch = (jnp.arange(num_nodes) * num_graphs // num_nodes).astype(jnp.int32)
        graphs.append((x, edge_index, batch, num_graphs))

    out = lagin_forward(params, graphs, nfeat=nfeat, nhid=nhid,
                        out_ch=out_ch, num_layers=num_layers)
    out = jax.block_until_ready(out)
    assert out.shape == (num_graphs, out_ch), out.shape

    ref = lagin_reference(params, graphs)
    # bf16 operands with f32 accumulation -> ~1e-2 relative error budget.
    assert jnp.allclose(out, ref, rtol=5e-2, atol=1e-1), \
        float(jnp.max(jnp.abs(out - ref)))

    print("KERNEL_OK")
</pallas_src>

<mosaic_0001>
module attributes {stable_mosaic.version = 11 : i64} {
  func.func @_branch_kernel(%arg0: i32, %arg1: memref<1x32x32xbf16, #tpu.memory_space<vmem>>, %arg2: memref<1x32x128xbf16, #tpu.memory_space<vmem>>, %arg3: memref<1x8x32xbf16, #tpu.memory_space<vmem>>, %arg4: memref<1x128x128xbf16, #tpu.memory_space<vmem>>, %arg5: memref<1x1x128xf32, #tpu.memory_space<vmem>>, %arg6: memref<1x128x128xbf16, #tpu.memory_space<vmem>>, %arg7: memref<1x1x128xf32, #tpu.memory_space<vmem>>, %arg8: memref<1x1x128x128xbf16, #tpu.memory_space<vmem>>, %arg9: memref<1x1x1x128xf32, #tpu.memory_space<vmem>>, %arg10: memref<1x1x128x128xbf16, #tpu.memory_space<vmem>>, %arg11: memref<1x1x1x128xf32, #tpu.memory_space<vmem>>, %arg12: memref<1x128x128xbf16, #tpu.memory_space<vmem>>, %arg13: memref<1x8x128xf32, #tpu.memory_space<vmem>>) attributes {dimension_semantics = [#tpu.dimension_semantics<parallel>], iteration_bounds = array<i64: 2>, scalar_prefetch = 0 : i64, scratch_operands = 0 : i64, tpu.core_type = #tpu.core_type<tc>, window_params = [{pipeline_mode = #tpu.pipeline_mode<synchronous>, transform_indices = @transform_0, window_bounds = array<i64: 1, 32, 32>}, {pipeline_mode = #tpu.pipeline_mode<synchronous>, transform_indices = @transform_1, window_bounds = array<i64: 1, 32, 128>}, {pipeline_mode = #tpu.pipeline_mode<synchronous>, transform_indices = @transform_2, window_bounds = array<i64: 1, 8, 32>}, {transform_indices = @transform_3, window_bounds = array<i64: 1, 128, 128>}, {transform_indices = @transform_4, window_bounds = array<i64: 1, 1, 128>}, {transform_indices = @transform_5, window_bounds = array<i64: 1, 128, 128>}, {transform_indices = @transform_6, window_bounds = array<i64: 1, 1, 128>}, {transform_indices = @transform_7, window_bounds = array<i64: 1, 1, 128, 128>}, {transform_indices = @transform_8, window_bounds = array<i64: 1, 1, 1, 128>}, {transform_indices = @transform_9, window_bounds = array<i64: 1, 1, 128, 128>}, {transform_indices = @transform_10, window_bounds = array<i64: 1, 1, 1, 128>}, {transform_indices = @transform_11, window_bounds = array<i64: 1, 128, 128>}, {transform_indices = @transform_12, window_bounds = array<i64: 1, 8, 128>}]} {
    %c0 = arith.constant 0 : index
    %c0_0 = arith.constant 0 : index
    %c0_1 = arith.constant 0 : index
    %0 = vector.load %arg1[%c0, %c0_0, %c0_1] : memref<1x32x32xbf16, #tpu.memory_space<vmem>>, vector<1x32x32xbf16>
    %1 = vector.shape_cast %0 : vector<1x32x32xbf16> to vector<32x32xbf16>
    %c0_2 = arith.constant 0 : index
    %c0_3 = arith.constant 0 : index
    %c0_4 = arith.constant 0 : index
    %2 = vector.load %arg2[%c0_2, %c0_3, %c0_4] : memref<1x32x128xbf16, #tpu.memory_space<vmem>>, vector<1x32x128xbf16>
    %3 = vector.shape_cast %2 : vector<1x32x128xbf16> to vector<32x128xbf16>
    %c0_5 = arith.constant 0 : index
    %c0_6 = arith.constant 0 : index
    %c0_7 = arith.constant 0 : index
    %4 = vector.load %arg4[%c0_5, %c0_6, %c0_7] : memref<1x128x128xbf16, #tpu.memory_space<vmem>>, vector<1x128x128xbf16>
    %5 = vector.shape_cast %4 : vector<1x128x128xbf16> to vector<128x128xbf16>
    %c0_8 = arith.constant 0 : index
    %c0_9 = arith.constant 0 : index
    %c0_10 = arith.constant 0 : index
    %6 = vector.load %arg5[%c0_8, %c0_9, %c0_10] : memref<1x1x128xf32, #tpu.memory_space<vmem>>, vector<1x1x128xf32>
    %7 = vector.shape_cast %6 : vector<1x1x128xf32> to vector<1x128xf32>
    %c0_11 = arith.constant 0 : index
    %c0_12 = arith.constant 0 : index
    %c0_13 = arith.constant 0 : index
    %8 = vector.load %arg6[%c0_11, %c0_12, %c0_13] : memref<1x128x128xbf16, #tpu.memory_space<vmem>>, vector<1x128x128xbf16>
    %9 = vector.shape_cast %8 : vector<1x128x128xbf16> to vector<128x128xbf16>
    %c0_14 = arith.constant 0 : index
    %c0_15 = arith.constant 0 : index
    %c0_16 = arith.constant 0 : index
    %10 = vector.load %arg7[%c0_14, %c0_15, %c0_16] : memref<1x1x128xf32, #tpu.memory_space<vmem>>, vector<1x1x128xf32>
    %11 = vector.shape_cast %10 : vector<1x1x128xf32> to vector<1x128xf32>
    %cst = arith.constant dense<0.000000e+00> : vector<32x128xf32>
    %12 = tpu.matmul %1, %3, %cst {dimension_numbers = #tpu.dot_dimension_numbers<[1], [0], [0], [1], [0, 0, 1, 1], [], []>} : vector<32x32xbf16>, vector<32x128xbf16>, vector<32x128xf32> -> vector<32x128xf32>
    %13 = arith.truncf %12 : vector<32x128xf32> to vector<32x128xbf16>
    %cst_17 = arith.constant dense<0.000000e+00> : vector<32x128xf32>
    %14 = tpu.matmul %13, %5, %cst_17 {dimension_numbers = #tpu.dot_dimension_numbers<[1], [0], [0], [1], [0, 0, 1, 1], [], []>} : vector<32x128xbf16>, vector<128x128xbf16>, vector<32x128xf32> -> vector<32x128xf32>
    %15 = vector.broadcast %7 : vector<1x128xf32> to vector<32x128xf32>
    %16 = arith.addf %14, %15 : vector<32x128xf32>
    %cst_18 = arith.constant 0.000000e+00 : f32
    %17 = vector.broadcast %cst_18 : f32 to vector<32x128xf32>
    %18 = arith.maximumf %16, %17 : vector<32x128xf32>
    %19 = arith.truncf %18 : vector<32x128xf32> to vector<32x128xbf16>
    %cst_19 = arith.constant dense<0.000000e+00> : vector<32x128xf32>
    %20 = tpu.matmul %19, %9, %cst_19 {dimension_numbers = #tpu.dot_dimension_numbers<[1], [0], [0], [1], [0, 0, 1, 1], [], []>} : vector<32x128xbf16>, vector<128x128xbf16>, vector<32x128xf32> -> vector<32x128xf32>
    %21 = vector.broadcast %11 : vector<1x128xf32> to vector<32x128xf32>
    %22 = arith.addf %20, %21 : vector<32x128xf32>
    %cst_20 = arith.constant 0.000000e+00 : f32
    %23 = vector.broadcast %cst_20 : f32 to vector<32x128xf32>
    %24 = arith.maximumf %22, %23 : vector<32x128xf32>
    %25 = arith.truncf %24 : vector<32x128xf32> to vector<32x128xbf16>
    %c0_21 = arith.constant 0 : index
    %c0_22 = arith.constant 0 : index
    %c0_23 = arith.constant 0 : index
    %c0_24 = arith.constant 0 : index
    %26 = vector.load %arg8[%c0_21, %c0_22, %c0_23, %c0_24] : memref<1x1x128x128xbf16, #tpu.memory_space<vmem>>, vector<1x1x128x128xbf16>
    %27 = vector.shape_cast %26 : vector<1x1x128x128xbf16> to vector<128x128xbf16>
    %c0_25 = arith.constant 0 : index
    %c0_26 = arith.constant 0 : index
    %c0_27 = arith.constant 0 : index
    %c0_28 = arith.constant 0 : index
    %28 = vector.load %arg9[%c0_25, %c0_26, %c0_27, %c0_28] : memref<1x1x1x128xf32, #tpu.memory_space<vmem>>, vector<1x1x1x128xf32>
    %29 = vector.shape_cast %28 : vector<1x1x1x128xf32> to vector<1x128xf32>
    %c0_29 = arith.constant 0 : index
    %c0_30 = arith.constant 0 : index
    %c0_31 = arith.constant 0 : index
    %c0_32 = arith.constant 0 : index
    %30 = vector.load %arg10[%c0_29, %c0_30, %c0_31, %c0_32] : memref<1x1x128x128xbf16, #tpu.memory_space<vmem>>, vector<1x1x128x128xbf16>
    %31 = vector.shape_cast %30 : vector<1x1x128x128xbf16> to vector<128x128xbf16>
    %c0_33 = arith.constant 0 : index
    %c0_34 = arith.constant 0 : index
    %c0_35 = arith.constant 0 : index
    %c0_36 = arith.constant 0 : index
    %32 = vector.load %arg11[%c0_33, %c0_34, %c0_35, %c0_36] : memref<1x1x1x128xf32, #tpu.memory_space<vmem>>, vector<1x1x1x128xf32>
    %33 = vector.shape_cast %32 : vector<1x1x1x128xf32> to vector<1x128xf32>
    %cst_37 = arith.constant dense<0.000000e+00> : vector<32x128xf32>
    %34 = tpu.matmul %1, %25, %cst_37 {dimension_numbers = #tpu.dot_dimension_numbers<[1], [0], [0], [1], [0, 0, 1, 1], [], []>} : vector<32x32xbf16>, vector<32x128xbf16>, vector<32x128xf32> -> vector<32x128xf32>
    %35 = arith.truncf %34 : vector<32x128xf32> to vector<32x128xbf16>
    %cst_38 = arith.constant dense<0.000000e+00> : vector<32x128xf32>
    %36 = tpu.matmul %35, %27, %cst_38 {dimension_numbers = #tpu.dot_dimension_numbers<[1], [0], [0], [1], [0, 0, 1, 1], [], []>} : vector<32x128xbf16>, vector<128x128xbf16>, vector<32x128xf32> -> vector<32x128xf32>
    %37 = vector.broadcast %29 : vector<1x128xf32> to vector<32x128xf32>
    %38 = arith.addf %36, %37 : vector<32x128xf32>
    %cst_39 = arith.constant 0.000000e+00 : f32
    %39 = vector.broadcast %cst_39 : f32 to vector<32x128xf32>
    %40 = arith.maximumf %38, %39 : vector<32x128xf32>
    %41 = arith.truncf %40 : vector<32x128xf32> to vector<32x128xbf16>
    %cst_40 = arith.constant dense<0.000000e+00> : vector<32x128xf32>
    %42 = tpu.matmul %41, %31, %cst_40 {dimension_numbers = #tpu.dot_dimension_numbers<[1], [0], [0], [1], [0, 0, 1, 1], [], []>} : vector<32x128xbf16>, vector<128x128xbf16>, vector<32x128xf32> -> vector<32x128xf32>
    %43 = vector.broadcast %33 : vector<1x128xf32> to vector<32x128xf32>
    %44 = arith.addf %42, %43 : vector<32x128xf32>
    %cst_41 = arith.constant 0.000000e+00 : f32
    %45 = vector.broadcast %cst_41 : f32 to vector<32x128xf32>
    %46 = arith.maximumf %44, %45 : vector<32x128xf32>
    %47 = arith.truncf %46 : vector<32x128xf32> to vector<32x128xbf16>
    %c0_42 = arith.constant 0 : index
    %c0_43 = arith.constant 0 : index
    %c0_44 = arith.constant 0 : index
    %48 = vector.load %arg3[%c0_42, %c0_43, %c0_44] : memref<1x8x32xbf16, #tpu.memory_space<vmem>>, vector<1x8x32xbf16>
    %49 = vector.shape_cast %48 : vector<1x8x32xbf16> to vector<8x32xbf16>
    %cst_45 = arith.constant dense<0.000000e+00> : vector<8x128xf32>
    %50 = tpu.matmul %49, %47, %cst_45 {dimension_numbers = #tpu.dot_dimension_numbers<[1], [0], [0], [1], [0, 0, 1, 1], [], []>} : vector<8x32xbf16>, vector<32x128xbf16>, vector<8x128xf32> -> vector<8x128xf32>
    %51 = arith.truncf %50 : vector<8x128xf32> to vector<8x128xbf16>
    %c0_46 = arith.constant 0 : index
    %c0_47 = arith.constant 0 : index
    %c0_48 = arith.constant 0 : index
    %52 = vector.load %arg12[%c0_46, %c0_47, %c0_48] : memref<1x128x128xbf16, #tpu.memory_space<vmem>>, vector<1x128x128xbf16>
    %53 = vector.shape_cast %52 : vector<1x128x128xbf16> to vector<128x128xbf16>
    %cst_49 = arith.constant dense<0.000000e+00> : vector<8x128xf32>
    %54 = tpu.matmul %51, %53, %cst_49 {dimension_numbers = #tpu.dot_dimension_numbers<[1], [0], [0], [1], [0, 0, 1, 1], [], []>} : vector<8x128xbf16>, vector<128x128xbf16>, vector<8x128xf32> -> vector<8x128xf32>
    %c0_50 = arith.constant 0 : index
    %c0_51 = arith.constant 0 : index
    %c0_52 = arith.constant 0 : index
    %55 = vector.load %arg13[%c0_50, %c0_51, %c0_52] : memref<1x8x128xf32, #tpu.memory_space<vmem>>, vector<1x8x128xf32>
    %56 = vector.shape_cast %55 : vector<1x8x128xf32> to vector<8x128xf32>
    %57 = vector.shape_cast %54 : vector<8x128xf32> to vector<1x8x128xf32>
    tpu.vector_store %arg13[%c0_50, %c0_51, %c0_52], %57 {strides = array<i32>} : memref<1x8x128xf32, #tpu.memory_space<vmem>>, vector<1x8x128xf32>,
    return
  }
  func.func @transform_0(%arg0: i32) -> (i32, i32, i32) {
    %c0_i32 = arith.constant 0 : i32
    %c0_i32_0 = arith.constant 0 : i32
    %c0_i32_1 = arith.constant 0 : i32
    return %arg0, %c0_i32, %c0_i32_0 : i32, i32, i32
  }
  func.func @transform_1(%arg0: i32) -> (i32, i32, i32) {
    %c0_i32 = arith.constant 0 : i32
    %c0_i32_0 = arith.constant 0 : i32
    %c0_i32_1 = arith.constant 0 : i32
    return %arg0, %c0_i32, %c0_i32_0 : i32, i32, i32
  }
  func.func @transform_2(%arg0: i32) -> (i32, i32, i32) {
    %c0_i32 = arith.constant 0 : i32
    %c0_i32_0 = arith.constant 0 : i32
    %c0_i32_1 = arith.constant 0 : i32
    return %arg0, %c0_i32, %c0_i32_0 : i32, i32, i32
  }
  func.func @transform_3(%arg0: i32) -> (i32, i32, i32) {
    %c0_i32 = arith.constant 0 : i32
    %c0_i32_0 = arith.constant 0 : i32
    %c0_i32_1 = arith.constant 0 : i32
    return %arg0, %c0_i32, %c0_i32_0 : i32, i32, i32
  }
  func.func @transform_4(%arg0: i32) -> (i32, i32, i32) {
    %c0_i32 = arith.constant 0 : i32
    %c0_i32_0 = arith.constant 0 : i32
    %c0_i32_1 = arith.constant 0 : i32
    return %arg0, %c0_i32, %c0_i32_0 : i32, i32, i32
  }
  func.func @transform_5(%arg0: i32) -> (i32, i32, i32) {
    %c0_i32 = arith.constant 0 : i32
    %c0_i32_0 = arith.constant 0 : i32
    %c0_i32_1 = arith.constant 0 : i32
    return %arg0, %c0_i32, %c0_i32_0 : i32, i32, i32
  }
  func.func @transform_6(%arg0: i32) -> (i32, i32, i32) {
    %c0_i32 = arith.constant 0 : i32
    %c0_i32_0 = arith.constant 0 : i32
    %c0_i32_1 = arith.constant 0 : i32
    return %arg0, %c0_i32, %c0_i32_0 : i32, i32, i32
  }
  func.func @transform_7(%arg0: i32) -> (i32, i32, i32, i32) {
    %c0_i32 = arith.constant 0 : i32
    %c0_i32_0 = arith.constant 0 : i32
    %c0_i32_1 = arith.constant 0 : i32
    %c0_i32_2 = arith.constant 0 : i32
    return %arg0, %c0_i32, %c0_i32_0, %c0_i32_1 : i32, i32, i32, i32
  }
  func.func @transform_8(%arg0: i32) -> (i32, i32, i32, i32) {
    %c0_i32 = arith.constant 0 : i32
    %c0_i32_0 = arith.constant 0 : i32
    %c0_i32_1 = arith.constant 0 : i32
    %c0_i32_2 = arith.constant 0 : i32
    return %arg0, %c0_i32, %c0_i32_0, %c0_i32_1 : i32, i32, i32, i32
  }
  func.func @transform_9(%arg0: i32) -> (i32, i32, i32, i32) {
    %c0_i32 = arith.constant 0 : i32
    %c0_i32_0 = arith.constant 0 : i32
    %c0_i32_1 = arith.constant 0 : i32
    %c0_i32_2 = arith.constant 0 : i32
    return %arg0, %c0_i32, %c0_i32_0, %c0_i32_1 : i32, i32, i32, i32
  }
  func.func @transform_10(%arg0: i32) -> (i32, i32, i32, i32) {
    %c0_i32 = arith.constant 0 : i32
    %c0_i32_0 = arith.constant 0 : i32
    %c0_i32_1 = arith.constant 0 : i32
    %c0_i32_2 = arith.constant 0 : i32
    return %arg0, %c0_i32, %c0_i32_0, %c0_i32_1 : i32, i32, i32, i32
  }
  func.func @transform_11(%arg0: i32) -> (i32, i32, i32) {
    %c0_i32 = arith.constant 0 : i32
    %c0_i32_0 = arith.constant 0 : i32
    %c0_i32_1 = arith.constant 0 : i32
    return %arg0, %c0_i32, %c0_i32_0 : i32, i32, i32
  }
  func.func @transform_12(%arg0: i32) -> (i32, i32, i32) {
    %c0_i32 = arith.constant 0 : i32
    %c0_i32_0 = arith.constant 0 : i32
    %c0_i32_1 = arith.constant 0 : i32
    return %arg0, %c0_i32, %c0_i32_0 : i32, i32, i32
  }
}

module attributes {stable_mosaic.version = 11 : i64} {
  func.func @_branch_kernel(%arg0: i32, %arg1: memref<1x32x32xbf16, #tpu.memory_space<vmem>>, %arg2: memref<1x32x128xbf16, #tpu.memory_space<vmem>>, %arg3: memref<1x8x32xbf16, #tpu.memory_space<vmem>>, %arg4: memref<1x128x128xbf16, #tpu.memory_space<vmem>>, %arg5: memref<1x1x128xf32, #tpu.memory_space<vmem>>, %arg6: memref<1x128x128xbf16, #tpu.memory_space<vmem>>, %arg7: memref<1x1x128xf32, #tpu.memory_space<vmem>>, %arg8: memref<1x1x128x128xbf16, #tpu.memory_space<vmem>>, %arg9: memref<1x1x1x128xf32, #tpu.memory_space<vmem>>, %arg10: memref<1x1x128x128xbf16, #tpu.memory_space<vmem>>, %arg11: memref<1x1x1x128xf32, #tpu.memory_space<vmem>>, %arg12: memref<1x128x128xbf16, #tpu.memory_space<vmem>>, %arg13: memref<1x8x128xf32, #tpu.memory_space<vmem>>) attributes {dimension_semantics = [#tpu.dimension_semantics<parallel>], iteration_bounds = array<i64: 2>, scalar_prefetch = 0 : i64, scratch_operands = 0 : i64, tpu.core_type = #tpu.core_type<tc>, window_params = [{transform_indices = @transform_0, window_bounds = array<i64: 1, 32, 32>}, {transform_indices = @transform_1, window_bounds = array<i64: 1, 32, 128>}, {transform_indices = @transform_2, window_bounds = array<i64: 1, 8, 32>}, {transform_indices = @transform_3, window_bounds = array<i64: 1, 128, 128>}, {transform_indices = @transform_4, window_bounds = array<i64: 1, 1, 128>}, {transform_indices = @transform_5, window_bounds = array<i64: 1, 128, 128>}, {transform_indices = @transform_6, window_bounds = array<i64: 1, 1, 128>}, {transform_indices = @transform_7, window_bounds = array<i64: 1, 1, 128, 128>}, {transform_indices = @transform_8, window_bounds = array<i64: 1, 1, 1, 128>}, {transform_indices = @transform_9, window_bounds = array<i64: 1, 1, 128, 128>}, {transform_indices = @transform_10, window_bounds = array<i64: 1, 1, 1, 128>}, {transform_indices = @transform_11, window_bounds = array<i64: 1, 128, 128>}, {transform_indices = @transform_12, window_bounds = array<i64: 1, 8, 128>}]} {
    %c0 = arith.constant 0 : index
    %c0_0 = arith.constant 0 : index
    %c0_1 = arith.constant 0 : index
    %0 = vector.load %arg1[%c0, %c0_0, %c0_1] : memref<1x32x32xbf16, #tpu.memory_space<vmem>>, vector<1x32x32xbf16>
    %1 = vector.shape_cast %0 : vector<1x32x32xbf16> to vector<32x32xbf16>
    %c0_2 = arith.constant 0 : index
    %c0_3 = arith.constant 0 : index
    %c0_4 = arith.constant 0 : index
    %2 = vector.load %arg2[%c0_2, %c0_3, %c0_4] : memref<1x32x128xbf16, #tpu.memory_space<vmem>>, vector<1x32x128xbf16>
    %3 = vector.shape_cast %2 : vector<1x32x128xbf16> to vector<32x128xbf16>
    %c0_5 = arith.constant 0 : index
    %c0_6 = arith.constant 0 : index
    %c0_7 = arith.constant 0 : index
    %4 = vector.load %arg4[%c0_5, %c0_6, %c0_7] : memref<1x128x128xbf16, #tpu.memory_space<vmem>>, vector<1x128x128xbf16>
    %5 = vector.shape_cast %4 : vector<1x128x128xbf16> to vector<128x128xbf16>
    %c0_8 = arith.constant 0 : index
    %c0_9 = arith.constant 0 : index
    %c0_10 = arith.constant 0 : index
    %6 = vector.load %arg5[%c0_8, %c0_9, %c0_10] : memref<1x1x128xf32, #tpu.memory_space<vmem>>, vector<1x1x128xf32>
    %7 = vector.shape_cast %6 : vector<1x1x128xf32> to vector<1x128xf32>
    %c0_11 = arith.constant 0 : index
    %c0_12 = arith.constant 0 : index
    %c0_13 = arith.constant 0 : index
    %8 = vector.load %arg6[%c0_11, %c0_12, %c0_13] : memref<1x128x128xbf16, #tpu.memory_space<vmem>>, vector<1x128x128xbf16>
    %9 = vector.shape_cast %8 : vector<1x128x128xbf16> to vector<128x128xbf16>
    %c0_14 = arith.constant 0 : index
    %c0_15 = arith.constant 0 : index
    %c0_16 = arith.constant 0 : index
    %10 = vector.load %arg7[%c0_14, %c0_15, %c0_16] : memref<1x1x128xf32, #tpu.memory_space<vmem>>, vector<1x1x128xf32>
    %11 = vector.shape_cast %10 : vector<1x1x128xf32> to vector<1x128xf32>
    %cst = arith.constant dense<0.000000e+00> : vector<32x128xf32>
    %12 = tpu.matmul %1, %3, %cst {dimension_numbers = #tpu.dot_dimension_numbers<[1], [0], [0], [1], [0, 0, 1, 1], [], []>} : vector<32x32xbf16>, vector<32x128xbf16>, vector<32x128xf32> -> vector<32x128xf32>
    %13 = arith.truncf %12 : vector<32x128xf32> to vector<32x128xbf16>
    %cst_17 = arith.constant dense<0.000000e+00> : vector<32x128xf32>
    %14 = tpu.matmul %13, %5, %cst_17 {dimension_numbers = #tpu.dot_dimension_numbers<[1], [0], [0], [1], [0, 0, 1, 1], [], []>} : vector<32x128xbf16>, vector<128x128xbf16>, vector<32x128xf32> -> vector<32x128xf32>
    %15 = vector.broadcast %7 : vector<1x128xf32> to vector<32x128xf32>
    %16 = arith.addf %14, %15 : vector<32x128xf32>
    %cst_18 = arith.constant 0.000000e+00 : f32
    %17 = vector.broadcast %cst_18 : f32 to vector<32x128xf32>
    %18 = arith.maximumf %16, %17 : vector<32x128xf32>
    %19 = arith.truncf %18 : vector<32x128xf32> to vector<32x128xbf16>
    %cst_19 = arith.constant dense<0.000000e+00> : vector<32x128xf32>
    %20 = tpu.matmul %19, %9, %cst_19 {dimension_numbers = #tpu.dot_dimension_numbers<[1], [0], [0], [1], [0, 0, 1, 1], [], []>} : vector<32x128xbf16>, vector<128x128xbf16>, vector<32x128xf32> -> vector<32x128xf32>
    %21 = vector.broadcast %11 : vector<1x128xf32> to vector<32x128xf32>
    %22 = arith.addf %20, %21 : vector<32x128xf32>
    %cst_20 = arith.constant 0.000000e+00 : f32
    %23 = vector.broadcast %cst_20 : f32 to vector<32x128xf32>
    %24 = arith.maximumf %22, %23 : vector<32x128xf32>
    %25 = arith.truncf %24 : vector<32x128xf32> to vector<32x128xbf16>
    %c0_21 = arith.constant 0 : index
    %c0_22 = arith.constant 0 : index
    %c0_23 = arith.constant 0 : index
    %c0_24 = arith.constant 0 : index
    %26 = vector.load %arg8[%c0_21, %c0_22, %c0_23, %c0_24] : memref<1x1x128x128xbf16, #tpu.memory_space<vmem>>, vector<1x1x128x128xbf16>
    %27 = vector.shape_cast %26 : vector<1x1x128x128xbf16> to vector<128x128xbf16>
    %c0_25 = arith.constant 0 : index
    %c0_26 = arith.constant 0 : index
    %c0_27 = arith.constant 0 : index
    %c0_28 = arith.constant 0 : index
    %28 = vector.load %arg9[%c0_25, %c0_26, %c0_27, %c0_28] : memref<1x1x1x128xf32, #tpu.memory_space<vmem>>, vector<1x1x1x128xf32>
    %29 = vector.shape_cast %28 : vector<1x1x1x128xf32> to vector<1x128xf32>
    %c0_29 = arith.constant 0 : index
    %c0_30 = arith.constant 0 : index
    %c0_31 = arith.constant 0 : index
    %c0_32 = arith.constant 0 : index
    %30 = vector.load %arg10[%c0_29, %c0_30, %c0_31, %c0_32] : memref<1x1x128x128xbf16, #tpu.memory_space<vmem>>, vector<1x1x128x128xbf16>
    %31 = vector.shape_cast %30 : vector<1x1x128x128xbf16> to vector<128x128xbf16>
    %c0_33 = arith.constant 0 : index
    %c0_34 = arith.constant 0 : index
    %c0_35 = arith.constant 0 : index
    %c0_36 = arith.constant 0 : index
    %32 = vector.load %arg11[%c0_33, %c0_34, %c0_35, %c0_36] : memref<1x1x1x128xf32, #tpu.memory_space<vmem>>, vector<1x1x1x128xf32>
    %33 = vector.shape_cast %32 : vector<1x1x1x128xf32> to vector<1x128xf32>
    %cst_37 = arith.constant dense<0.000000e+00> : vector<32x128xf32>
    %34 = tpu.matmul %1, %25, %cst_37 {dimension_numbers = #tpu.dot_dimension_numbers<[1], [0], [0], [1], [0, 0, 1, 1], [], []>} : vector<32x32xbf16>, vector<32x128xbf16>, vector<32x128xf32> -> vector<32x128xf32>
    %35 = arith.truncf %34 : vector<32x128xf32> to vector<32x128xbf16>
    %cst_38 = arith.constant dense<0.000000e+00> : vector<32x128xf32>
    %36 = tpu.matmul %35, %27, %cst_38 {dimension_numbers = #tpu.dot_dimension_numbers<[1], [0], [0], [1], [0, 0, 1, 1], [], []>} : vector<32x128xbf16>, vector<128x128xbf16>, vector<32x128xf32> -> vector<32x128xf32>
    %37 = vector.broadcast %29 : vector<1x128xf32> to vector<32x128xf32>
    %38 = arith.addf %36, %37 : vector<32x128xf32>
    %cst_39 = arith.constant 0.000000e+00 : f32
    %39 = vector.broadcast %cst_39 : f32 to vector<32x128xf32>
    %40 = arith.maximumf %38, %39 : vector<32x128xf32>
    %41 = arith.truncf %40 : vector<32x128xf32> to vector<32x128xbf16>
    %cst_40 = arith.constant dense<0.000000e+00> : vector<32x128xf32>
    %42 = tpu.matmul %41, %31, %cst_40 {dimension_numbers = #tpu.dot_dimension_numbers<[1], [0], [0], [1], [0, 0, 1, 1], [], []>} : vector<32x128xbf16>, vector<128x128xbf16>, vector<32x128xf32> -> vector<32x128xf32>
    %43 = vector.broadcast %33 : vector<1x128xf32> to vector<32x128xf32>
    %44 = arith.addf %42, %43 : vector<32x128xf32>
    %cst_41 = arith.constant 0.000000e+00 : f32
    %45 = vector.broadcast %cst_41 : f32 to vector<32x128xf32>
    %46 = arith.maximumf %44, %45 : vector<32x128xf32>
    %47 = arith.truncf %46 : vector<32x128xf32> to vector<32x128xbf16>
    %c0_42 = arith.constant 0 : index
    %c0_43 = arith.constant 0 : index
    %c0_44 = arith.constant 0 : index
    %48 = vector.load %arg3[%c0_42, %c0_43, %c0_44] : memref<1x8x32xbf16, #tpu.memory_space<vmem>>, vector<1x8x32xbf16>
    %49 = vector.shape_cast %48 : vector<1x8x32xbf16> to vector<8x32xbf16>
    %cst_45 = arith.constant dense<0.000000e+00> : vector<8x128xf32>
    %50 = tpu.matmul %49, %47, %cst_45 {dimension_numbers = #tpu.dot_dimension_numbers<[1], [0], [0], [1], [0, 0, 1, 1], [], []>} : vector<8x32xbf16>, vector<32x128xbf16>, vector<8x128xf32> -> vector<8x128xf32>
    %51 = arith.truncf %50 : vector<8x128xf32> to vector<8x128xbf16>
    %c0_46 = arith.constant 0 : index
    %c0_47 = arith.constant 0 : index
    %c0_48 = arith.constant 0 : index
    %52 = vector.load %arg12[%c0_46, %c0_47, %c0_48] : memref<1x128x128xbf16, #tpu.memory_space<vmem>>, vector<1x128x128xbf16>
    %53 = vector.shape_cast %52 : vector<1x128x128xbf16> to vector<128x128xbf16>
    %cst_49 = arith.constant dense<0.000000e+00> : vector<8x128xf32>
    %54 = tpu.matmul %51, %53, %cst_49 {dimension_numbers = #tpu.dot_dimension_numbers<[1], [0], [0], [1], [0, 0, 1, 1], [], []>} : vector<8x128xbf16>, vector<128x128xbf16>, vector<8x128xf32> -> vector<8x128xf32>
    %c0_50 = arith.constant 0 : index
    %c0_51 = arith.constant 0 : index
    %c0_52 = arith.constant 0 : index
    %55 = vector.load %arg13[%c0_50, %c0_51, %c0_52] : memref<1x8x128xf32, #tpu.memory_space<vmem>>, vector<1x8x128xf32>
    %56 = vector.shape_cast %55 : vector<1x8x128xf32> to vector<8x128xf32>
    %57 = vector.shape_cast %54 : vector<8x128xf32> to vector<1x8x128xf32>
    tpu.vector_store %arg13[%c0_50, %c0_51, %c0_52], %57 {strides = array<i32>} : memref<1x8x128xf32, #tpu.memory_space<vmem>>, vector<1x8x128xf32>,
    return
  }
  func.func @transform_0(%arg0: i32) -> (i32, i32, i32) {
    %c0_i32 = arith.constant 0 : i32
    %c0_i32_0 = arith.constant 0 : i32
    %c0_i32_1 = arith.constant 0 : i32
    return %arg0, %c0_i32, %c0_i32_0 : i32, i32, i32
  }
  func.func @transform_1(%arg0: i32) -> (i32, i32, i32) {
    %c0_i32 = arith.constant 0 : i32
    %c0_i32_0 = arith.constant 0 : i32
    %c0_i32_1 = arith.constant 0 : i32
    return %arg0, %c0_i32, %c0_i32_0 : i32, i32, i32
  }
  func.func @transform_2(%arg0: i32) -> (i32, i32, i32) {
    %c0_i32 = arith.constant 0 : i32
    %c0_i32_0 = arith.constant 0 : i32
    %c0_i32_1 = arith.constant 0 : i32
    return %arg0, %c0_i32, %c0_i32_0 : i32, i32, i32
  }
  func.func @transform_3(%arg0: i32) -> (i32, i32, i32) {
    %c0_i32 = arith.constant 0 : i32
    %c0_i32_0 = arith.constant 0 : i32
    %c0_i32_1 = arith.constant 0 : i32
    return %arg0, %c0_i32, %c0_i32_0 : i32, i32, i32
  }
  func.func @transform_4(%arg0: i32) -> (i32, i32, i32) {
    %c0_i32 = arith.constant 0 : i32
    %c0_i32_0 = arith.constant 0 : i32
    %c0_i32_1 = arith.constant 0 : i32
    return %arg0, %c0_i32, %c0_i32_0 : i32, i32, i32
  }
  func.func @transform_5(%arg0: i32) -> (i32, i32, i32) {
    %c0_i32 = arith.constant 0 : i32
    %c0_i32_0 = arith.constant 0 : i32
    %c0_i32_1 = arith.constant 0 : i32
    return %arg0, %c0_i32, %c0_i32_0 : i32, i32, i32
  }
  func.func @transform_6(%arg0: i32) -> (i32, i32, i32) {
    %c0_i32 = arith.constant 0 : i32
    %c0_i32_0 = arith.constant 0 : i32
    %c0_i32_1 = arith.constant 0 : i32
    return %arg0, %c0_i32, %c0_i32_0 : i32, i32, i32
  }
  func.func @transform_7(%arg0: i32) -> (i32, i32, i32, i32) {
    %c0_i32 = arith.constant 0 : i32
    %c0_i32_0 = arith.constant 0 : i32
    %c0_i32_1 = arith.constant 0 : i32
    %c0_i32_2 = arith.constant 0 : i32
    return %arg0, %c0_i32, %c0_i32_0, %c0_i32_1 : i32, i32, i32, i32
  }
  func.func @transform_8(%arg0: i32) -> (i32, i32, i32, i32) {
    %c0_i32 = arith.constant 0 : i32
    %c0_i32_0 = arith.constant 0 : i32
    %c0_i32_1 = arith.constant 0 : i32
    %c0_i32_2 = arith.constant 0 : i32
    return %arg0, %c0_i32, %c0_i32_0, %c0_i32_1 : i32, i32, i32, i32
  }
  func.func @transform_9(%arg0: i32) -> (i32, i32, i32, i32) {
    %c0_i32 = arith.constant 0 : i32
    %c0_i32_0 = arith.constant 0 : i32
    %c0_i32_1 = arith.constant 0 : i32
    %c0_i32_2 = arith.constant 0 : i32
    return %arg0, %c0_i32, %c0_i32_0, %c0_i32_1 : i32, i32, i32, i32
  }
  func.func @transform_10(%arg0: i32) -> (i32, i32, i32, i32) {
    %c0_i32 = arith.constant 0 : i32
    %c0_i32_0 = arith.constant 0 : i32
    %c0_i32_1 = arith.constant 0 : i32
    %c0_i32_2 = arith.constant 0 : i32
    return %arg0, %c0_i32, %c0_i32_0, %c0_i32_1 : i32, i32, i32, i32
  }
  func.func @transform_11(%arg0: i32) -> (i32, i32, i32) {
    %c0_i32 = arith.constant 0 : i32
    %c0_i32_0 = arith.constant 0 : i32
    %c0_i32_1 = arith.constant 0 : i32
    return %arg0, %c0_i32, %c0_i32_0 : i32, i32, i32
  }
  func.func @transform_12(%arg0: i32) -> (i32, i32, i32) {
    %c0_i32 = arith.constant 0 : i32
    %c0_i32_0 = arith.constant 0 : i32
    %c0_i32_1 = arith.constant 0 : i32
    return %arg0, %c0_i32, %c0_i32_0 : i32, i32, i32
  }
}

</mosaic_0001>

<bundles_post_ra>
// kernel: tpu_custom_call.1
= control target key start
LH: loop header
LB: loop body
LE: loop exit
PB: predicated region body
PF: predicated region fallthrough
CT: control target
= control target key end

     0   :  { %s2687_s0 = inlined_call_operand.hbm [shape: bf16[2,32,32], index: 0, kind: input, shape index: {}]   ;;  %s2688_s1 = inlined_call_operand.hbm [shape: bf16[2,32,128], index: 1, kind: input, shape index: {}]   ;;  %s2689_s2 = inlined_call_operand.hbm [shape: bf16[2,8,32], index: 2, kind: input, shape index: {}]   ;;  %s2690_s3 = inlined_call_operand.hbm [shape: bf16[2,128,128], index: 3, kind: input, shape index: {}]   ;;  %s2691_s4 = inlined_call_operand.vmem [shape: f32[2,1,128], index: 4, kind: input, shape index: {}]   ;;  %s2692_s5 = inlined_call_operand.hbm [shape: bf16[2,128,128], index: 5, kind: input, shape index: {}]   ;;  %s2693_s6 = inlined_call_operand.vmem [shape: f32[2,1,128], index: 6, kind: input, shape index: {}]   ;;  %s2694_s7 = inlined_call_operand.hbm [shape: bf16[2,1,128,128], index: 7, kind: input, shape index: {}]   ;;  %s2695_s8 = inlined_call_operand.vmem [shape: f32[2,1,1,128], index: 8, kind: input, shape index: {}]   ;;  %s2696_s9 = inlined_call_operand.hbm [shape: bf16[2,1,128,128], index: 9, kind: input, shape index: {}]   ;;  %s2697_s10 = inlined_call_operand.vmem [shape: f32[2,1,1,128], index: 10, kind: input, shape index: {}]   ;;  %s2698_s11 = inlined_call_operand.hbm [shape: bf16[2,128,128], index: 11, kind: input, shape index: {}]   ;;  %s2699_s12 = inlined_call_operand.hbm [shape: f32[2,8,128], index: 12, kind: output, shape index: {}]  }
   0x1   :  { %2722 = sst [smem:[#allocation31_spill]] %s2688_s1 }
   0x2   :  { %2723 = sst [smem:[#allocation32_spill]] %s2690_s3 }
   0x3   :  { %2724 = sst [smem:[#allocation33_spill]] %s2691_s4 }
   0x4   :  { %2725 = sst [smem:[#allocation34_spill]] %s2693_s6 }
   0x5   :  { %2726 = sst [smem:[#allocation35_spill]] %s2695_s8 }
   0x6   :  { %2727 = sst [smem:[#allocation36_spill]] %s2697_s10 }
   0x7   :  { %2728 = sst [smem:[#allocation37_spill]] %s2698_s11 }
   0x8   :  { %2729 = sst [smem:[#allocation38_spill]] %s2699_s12 }
   0x9   :  { %17 = vsyncpa [#allocation3], 0 }
   0xa   :  { %18 = vsyncpa [#allocation6], 0 }
   0xb   :  { %19 = vsyncpa [#allocation9], 0 }
   0xc   :  { %21 = vsyncpa [#allocation9 + $0x1], 0 }
   0xd   :  { %22 = vsyncpa [#allocation12], 0 }
   0xe   :  { %24 = vsyncpa [#allocation12 + $0x1], 0 }
   0xf   :  { %25 = vsyncpa [#allocation15], 0 }
  0x10   :  { %27 = vsyncpa [#allocation15 + $0x1], 0 }
  0x11   :  { %28 = vsyncpa [#allocation4], 0 }
  0x12   :  { %30 = vsyncpa [#allocation4 + $0x1], 0  ;;  %s2267_s21 = smov 0   ;;  %s2269_s22 = smov 0  }
  0x13   :  { %s2271_s23 = smov 0   ;;  %s2273_s24 = smov 0  }
  0x14 LB: > { %2730 = sst [smem:[#allocation23_spill]] %s2183_s21  ;;  %s2288_s25 = sadd.s32 4294967295, %s2195_s24   ;;  %s2195_s24 = sphi %s2273_s24, %s2771_s24   ;;  %s2191_s23 = sphi %s2271_s23, %s2775_s23   ;;  %s2187_s22 = sphi %s2269_s22, %s2774_s22   ;;  %s2183_s21 = sphi %s2267_s21, %s2772_s21  }
  0x15   : > { %2731 = sst [smem:[#allocation24_spill]] %s2187_s22  ;;  %s1516_s26 = sadd.s32 4294967294, %s2195_s24  }
  0x16   : > { %s2292_s27 = sadd.s32 1, %s2195_s24   ;;  %s43_s28 = sadd.s32 1, %s2191_s23 }
  0x17   : > { %2732 = sst [smem:[#allocation25_spill]] %s2292_s27  ;;  %s40_s29 = ssub.s32 %s2195_s24, %s2292_s27 }
  0x18   : > { %p56_p0 = scmp.ne.s32.totalorder %s2187_s22, %s2183_s21  ;;  %p41_p1 = scmp.eq.s32.totalorder %s40_s29, 0 }
  0x19   : > { %p57_p2 = scmp.eq.s32.totalorder %s2288_s25, 0  ;;  %p128_p3 = scmp.ne.s32.totalorder %s2191_s23, %s2187_s22 }
  0x1a   : > { %p366_p4 = scmp.eq.s32.totalorder %s2288_s25, 1  ;;  %p372_p7 = scmp.eq.s32.totalorder %s1516_s26, 1 }
  0x1b   : > { %s2304_s30 = scalar_select %p41_p1, %s2191_s23, %s43_s28  }
  0x1c   : > { %p2306_p5 = por %p57_p2, %p56_p0  ;;  %p2313_p6 = por %p366_p4, %p128_p3 }
  0x1d   : > { %2733 = sst [smem:[#allocation26_spill]] %s2304_s30  ;;  %p1517_p8 = scmp.ge.s32.totalorder %s2195_s24, 1 }
  0x1e   : > { %s2734_s13 = scalar_select %p2306_p5, 1, 0 }
  0x1f   : > { %s2736_s14 = scalar_select %p2313_p6, 1, 0 }
  0x20   : > { %2735 = sst [smem:[#allocation27_spill]] %s2734_s13  ;;  %p379_p9 = scmp.lt.s32.totalorder %s2195_s24, 3 }
  0x21   : > { %2737 = sst [smem:[#allocation28_spill]] %s2736_s14  ;;  %s2700_s15 = sshll.u32 %s2288_s25, 4 }
  0x22   : > { %p2320_p10 = por %p372_p7, %p56_p0  ;;  %p2324_p11 = pnand %p1517_p8, %p379_p9 }
  0x23   : > { %s2742_s1 = sld [smem:[#allocation31_spill]]  ;;  %s2197_s28 = smov [#allocation5]  }
  0x24   : > { %s2738_s16 = scalar_select %p2320_p10, 1, 0 }
  0x25   : > { %s2740_s17 = scalar_select %p2324_p11, 1, 0 }
  0x26   : > { %2739 = sst [smem:[#allocation29_spill]] %s2738_s16  ;;  %p1800_p12 = pneg %p2324_p11 }
  0x27   : > { %2741 = sst [smem:[#allocation30_spill]] %s2740_s17  ;;  %s412_s29 = sshll.u32 %s2197_s28, 4  ;;  %s413_s29 = int_to_ptr.vmem [resolvable:$true] %s412_s29 }
  0x28   : > { %p2337_p13 = pnand %p1800_p12, %p2306_p5 }
  0x29   : > { %s409_s20 = scalar_lea.hbm %s2742_s1, %s2700_s15  ;;  %s1880_s15 = scalar_lea.hbm %s2742_s1, 32 }
  0x2a   : > { %s410_s26 = sshll.u32 %s409_s20, 4  ;;  %p2715_p7 = pneg %p2337_p13  ;;  %s411_s26 = int_to_ptr.hbm [resolvable:$true] %s410_s26 }
  0x2b   : > { %s1873_s18 = sshra.s32 %s411_s26, 4  ;;  %s1874_s18 = int_to_ptr.hbm [resolvable:$true] %s1873_s18 }
  0x2c   : > { %s1875_s19 = scalar_lea.hbm %s1874_s18, 16  ;;  %p1881_p12 = scmp.lt.s32.totalorder %s1874_s18, %s2742_s1 }
  0x2d   : > { %p1876_p4 = scmp.ne.s32.totalorder %s1874_s18, %s1875_s19  ;;  %p1882_p0 = scmp.lt.s32.totalorder %s1880_s15, %s1875_s19 }
  0x2f   : > { %p1878_p8 = pnand %p2715_p7, %p1876_p4  ;;  %p1883_p2 = por %p1882_p0, %p1881_p12 }
  0x31   : > { %p1879_p9 = pneg %p1878_p8 }
  0x33   : > { %p1884_p1 = pnand %p1883_p2, %p1879_p9 }
  0x35   : > { %1887 = shalt.err (!%p1884_p1)
}
  0x36   : > { %s2709_s21 = smov 64   ;;  %s2711_s20 = smov 4  }
  0x37   : > { %1806 = dma.hbm_to_vmem [thread:$0]  (!%p2337_p13), %s411_s26, 256, %s413_s29, [#allocation6], %s2709_s21, %s2709_s21, %s2711_s20  }
  0x38   : > { %p2744_p0 = scmp.eq.s32.totalorder %s2195_s24, 0  ;;  %s2708_s15 = sand.u32 1, %s2191_s23  }
  0x39   : > { %s2369_s16 = sshll.u32 %s2708_s15, 6  ;;  %s2372_s18 = sshll.u32 %s2195_s24, 6 }
  0x3a   : > { %p130_p1 = por %p2744_p0, %p128_p3  ;;  %s2745_s3 = sld [smem:[#allocation32_spill]] }
  0x3b   : > { %s444_s14 = scalar_lea.vmem [#allocation8], %s2369_s16  ;;  %p2746_p3 = scmp.lt.s32.totalorder %s2195_s24, 2 }
  0x3c   : > { %s452_s26 = sshll.u32 %s444_s14, 4  ;;  %s505_s20 = scalar_lea.hbm %s2694_s7, %s2372_s18  ;;  %s453_s26 = int_to_ptr.vmem [resolvable:$true] %s452_s26 }
  0x3d   : > { %p2381_p2 = pnand %p2746_p3, %p130_p1  ;;  %s2389_s27 = sshll.u32 %s505_s20, 4  ;;  %s507_s27 = int_to_ptr.hbm [resolvable:$true] %s2389_s27 }
  0x3e   : > { %s2748_s19 = sand.u32 1, %s2195_s24  }
  0x3f   : > { %s2393_s28 = scalar_lea.sflag [#allocation9], %s2748_s19  ;;  %p2397_p8 = pneg %p2381_p2 }
  0x40   : > { %s449_s1 = scalar_lea.hbm %s2745_s3, %s2372_s18  ;;  %s1910_s20 = scalar_lea.hbm %s2745_s3, 128 }
  0x41   : > { %s450_s12 = sshll.u32 %s449_s1, 4  ;;  %s451_s12 = int_to_ptr.hbm [resolvable:$true] %s450_s12 }
  0x42   : > { %s1903_s1 = sshra.s32 %s451_s12, 4  ;;  %s1904_s1 = int_to_ptr.hbm [resolvable:$true] %s1903_s1 }
  0x43   : > { %s1905_s14 = scalar_lea.hbm %s1904_s1, 64  ;;  %p1911_p0 = scmp.lt.s32.totalorder %s1904_s1, %s2745_s3 }
  0x44   : > { %p1906_p4 = scmp.ne.s32.totalorder %s1904_s1, %s1905_s14  ;;  %p1912_p1 = scmp.lt.s32.totalorder %s1910_s20, %s1905_s14 }
  0x46   : > { %p1908_p9 = pnand %p2397_p8, %p1906_p4  ;;  %p1913_p3 = por %p1912_p1, %p1911_p0 }
  0x48   : > { %p1909_p12 = pneg %p1908_p9 }
  0x4a   : > { %p1914_p7 = pnand %p1913_p3, %p1909_p12 }
  0x4c   : > { %1917 = shalt.err (!%p1914_p7)
}
  0x4d   : > { %s2750_s6 = smov 4   ;;  %s2751_s4 = smov 64  }
  0x4e   : > { %1813 = dma.hbm_to_vmem [thread:$0]  (!%p2381_p2), %s451_s12, 1024, %s453_s26, %s2393_s28, %s2751_s4, %s2751_s4, %s2750_s6  }
  0x4f   : > { %s500_s21 = scalar_lea.vmem [#allocation11], %s2369_s16  ;;  %s2752_s1 = sshll.u32 %s2288_s25, 4 }
  0x50   : > { %s508_s8 = sshll.u32 %s500_s21, 4  ;;  %s392_s20 = scalar_lea.hbm %s2687_s0, %s2752_s1  ;;  %s509_s8 = int_to_ptr.vmem [resolvable:$true] %s508_s8 }
  0x51   : > { %s2753_s19 = sand.u32 1, %s2195_s24   ;;  %s1933_s22 = sshra.s32 %s507_s27, 4  ;;  %s1934_s22 = int_to_ptr.hbm [resolvable:$true] %s1933_s22 }
  0x52   : > { %s2424_s3 = scalar_lea.sflag [#allocation12], %s2753_s19  ;;  %s1935_s13 = scalar_lea.hbm %s1934_s22, 64 }
  0x53   : > { %p1936_p7 = scmp.ne.s32.totalorder %s1934_s22, %s1935_s13  ;;  %s1940_s21 = scalar_lea.hbm %s2694_s7, 128 }
  0x54   : > { %p1941_p12 = scmp.lt.s32.totalorder %s1934_s22, %s2694_s7  ;;  %p1942_p0 = scmp.lt.s32.totalorder %s1940_s21, %s1935_s13 }
  0x55   : > { %p1938_p4 = pnand %p1936_p7, %p2397_p8 }
  0x56   : > { %p1943_p1 = por %p1942_p0, %p1941_p12 }
  0x57   : > { %p1939_p9 = pneg %p1938_p4 }
  0x59   : > { %p1944_p3 = pnand %p1943_p1, %p1939_p9 }
  0x5b   : > { %1947 = shalt.err (!%p1944_p3)
}
  0x5c   : > { %1819 = dma.hbm_to_vmem [thread:$0]  (!%p2381_p2), %s507_s27, 1024, %s509_s8, %s2424_s3, %s2751_s4, %s2751_s4, %s2750_s6  }
  0x5d   : > { %s393_s1 = sshll.u32 %s392_s20, 4  ;;  %s2200_s14 = smov [#allocation2]   ;;  %s394_s1 = int_to_ptr.hbm [resolvable:$true] %s393_s1 }
  0x5e   : > { %s395_s15 = sshll.u32 %s2200_s14, 4  ;;  %s1522_s11 = sshll.u32 %s2288_s25, 2  ;;  %s396_s15 = int_to_ptr.vmem [resolvable:$true] %s395_s15 }
  0x5f   : > { %s1963_s22 = sshra.s32 %s394_s1, 4  ;;  %p2754_p4 = pneg %p2337_p13  ;;  %s1964_s22 = int_to_ptr.hbm [resolvable:$true] %s1963_s22 }
  0x60   : > { %s1965_s13 = scalar_lea.hbm %s1964_s22, 16  ;;  %s1970_s12 = scalar_lea.hbm %s2687_s0, 32 }
  0x61   : > { %p1966_p7 = scmp.ne.s32.totalorder %s1964_s22, %s1965_s13  ;;  %p1971_p0 = scmp.lt.s32.totalorder %s1964_s22, %s2687_s0 }
  0x62   : > { %p1972_p1 = scmp.lt.s32.totalorder %s1970_s12, %s1965_s13 }
  0x63   : > { %p1968_p9 = pnand %p1966_p7, %p2754_p4 }
  0x64   : > { %p1973_p3 = por %p1972_p1, %p1971_p0 }
  0x65   : > { %p1969_p12 = pneg %p1968_p9 }
  0x67   : > { %p1974_p10 = pnand %p1973_p3, %p1969_p12 }
  0x69   : > { %1977 = shalt.err (!%p1974_p10)
}
  0x6a   : > { %1803 = dma.hbm_to_vmem [thread:$0]  (!%p2337_p13), %s394_s1, 256, %s396_s15, [#allocation3], %s2751_s4, %s2751_s4, %s2750_s6  }
  0x6b   : > { %s425_s21 = scalar_lea.hbm %s2689_s2, %s1522_s11  ;;  %s2201_s17 = smov [#allocation7]  }
  0x6c   : > { %s427_s14 = sshll.u32 %s425_s21, 4  ;;  %s429_s19 = sshll.u32 %s2201_s17, 4  ;;  %s428_s14 = int_to_ptr.hbm [resolvable:$true] %s427_s14  ;;  %s430_s19 = int_to_ptr.vmem [resolvable:$true] %s429_s19 }
  0x6d   : > { %s1993_s22 = sshra.s32 %s428_s14, 4  ;;  %p2755_p7 = pmov %p2754_p4  ;;  %s1994_s22 = int_to_ptr.hbm [resolvable:$true] %s1993_s22 }
  0x6e   : > { %s1995_s13 = scalar_lea.hbm %s1994_s22, 4  ;;  %s2000_s1 = scalar_lea.hbm %s2689_s2, 8 }
  0x6f   : > { %p1996_p10 = scmp.ne.s32.totalorder %s1994_s22, %s1995_s13  ;;  %p2001_p12 = scmp.lt.s32.totalorder %s1994_s22, %s2689_s2 }
  0x70   : > { %p2002_p0 = scmp.lt.s32.totalorder %s2000_s1, %s1995_s13 }
  0x71   : > { %p1998_p4 = pnand %p1996_p10, %p2755_p7 }
  0x72   : > { %p2003_p1 = por %p2002_p0, %p2001_p12 }
  0x73   : > { %p1999_p9 = pneg %p1998_p4 }
  0x75   : > { %p2004_p3 = pnand %p2003_p1, %p1999_p9 }
  0x77   : > { %2007 = shalt.err (!%p2004_p3)
}
  0x78   : > { %1809 = dma.hbm_to_vmem [thread:$0]  (!%p2337_p13), %s428_s14, 64, %s430_s19, [#allocation6]  }
  0x79   : > { %s477_s20 = scalar_lea.hbm %s2692_s5, %s2372_s18  ;;  %s472_s17 = scalar_lea.vmem [#allocation10], %s2369_s16 }
  0x7a   : > { %s478_s21 = sshll.u32 %s477_s20, 4  ;;  %s480_s12 = sshll.u32 %s472_s17, 4  ;;  %s479_s21 = int_to_ptr.hbm [resolvable:$true] %s478_s21  ;;  %s481_s12 = int_to_ptr.vmem [resolvable:$true] %s480_s12 }
  0x7b   : > { %s2023_s22 = sshra.s32 %s479_s21, 4  ;;  %s2030_s14 = scalar_lea.hbm %s2692_s5, 128  ;;  %s2024_s22 = int_to_ptr.hbm [resolvable:$true] %s2023_s22 }
  0x7c   : > { %s2025_s13 = scalar_lea.hbm %s2024_s22, 64  ;;  %p2031_p13 = scmp.lt.s32.totalorder %s2024_s22, %s2692_s5 }
  0x7d   : > { %p2026_p10 = scmp.ne.s32.totalorder %s2024_s22, %s2025_s13  ;;  %p2032_p9 = scmp.lt.s32.totalorder %s2030_s14, %s2025_s13 }
  0x7f   : > { %p2028_p7 = pnand %p2026_p10, %p2397_p8  ;;  %p2033_p12 = por %p2032_p9, %p2031_p13 }
  0x81   : > { %p2029_p4 = pneg %p2028_p7 }
  0x83   : > { %p2034_p0 = pnand %p2033_p12, %p2029_p4 }
  0x85   : > { %2037 = shalt.err (!%p2034_p0)
}
  0x86   : > { %1816 = dma.hbm_to_vmem [thread:$0]  (!%p2381_p2), %s479_s21, 1024, %s481_s12, %s2393_s28, %s2751_s4, %s2751_s4, %s2750_s6  }
  0x87   : > { %s533_s11 = scalar_lea.hbm %s2696_s9, %s2372_s18  ;;  %s528_s20 = scalar_lea.vmem [#allocation13], %s2369_s16 }
  0x88   : > { %s534_s8 = sshll.u32 %s533_s11, 4  ;;  %s536_s17 = sshll.u32 %s528_s20, 4  ;;  %s535_s8 = int_to_ptr.hbm [resolvable:$true] %s534_s8  ;;  %s537_s17 = int_to_ptr.vmem [resolvable:$true] %s536_s17 }
  0x89   : > { %s2053_s22 = sshra.s32 %s535_s8, 4  ;;  %s2060_s28 = scalar_lea.hbm %s2696_s9, 128  ;;  %s2054_s22 = int_to_ptr.hbm [resolvable:$true] %s2053_s22 }
  0x8a   : > { %s2055_s13 = scalar_lea.hbm %s2054_s22, 64  ;;  %p2061_p7 = scmp.lt.s32.totalorder %s2054_s22, %s2696_s9 }
  0x8b   : > { %p2056_p1 = scmp.ne.s32.totalorder %s2054_s22, %s2055_s13  ;;  %p2062_p4 = scmp.lt.s32.totalorder %s2060_s28, %s2055_s13 }
  0x8d   : > { %p2058_p3 = pnand %p2056_p1, %p2397_p8  ;;  %p2063_p13 = por %p2062_p4, %p2061_p7 }
  0x8f   : > { %p2059_p10 = pneg %p2058_p3 }
  0x91   : > { %p2064_p9 = pnand %p2063_p13, %p2059_p10 }
  0x93   : > { %2067 = shalt.err (!%p2064_p9)
}
  0x94   : > { %1822 = dma.hbm_to_vmem [thread:$0]  (!%p2381_p2), %s535_s8, 1024, %s537_s17, %s2424_s3, %s2751_s4, %s2751_s4, %s2750_s6  }
  0x95   : > { %s2756_s1 = sld [smem:[#allocation37_spill]]  ;;  %s556_s27 = scalar_lea.vmem [#allocation14], %s2369_s16 }
  0x96   : > { %s564_s11 = sshll.u32 %s556_s27, 4  ;;  %s2757_s22 = sand.u32 1, %s2191_s23   ;;  %s565_s11 = int_to_ptr.vmem [resolvable:$true] %s564_s11 }
  0x97   : > { %s553_s13 = scalar_lea.sflag [#allocation15], %s2757_s22 }
  0x9b   : > { %s561_s15 = scalar_lea.hbm %s2756_s1, %s2372_s18  ;;  %s2090_s8 = scalar_lea.hbm %s2756_s1, 128 }
  0x9c   : > { %s562_s20 = sshll.u32 %s561_s15, 4  ;;  %s563_s20 = int_to_ptr.hbm [resolvable:$true] %s562_s20 }
  0x9d   : > { %s2083_s30 = sshra.s32 %s563_s20, 4  ;;  %s2084_s30 = int_to_ptr.hbm [resolvable:$true] %s2083_s30 }
  0x9e   : > { %s2085_s26 = scalar_lea.hbm %s2084_s30, 64  ;;  %p2091_p3 = scmp.lt.s32.totalorder %s2084_s30, %s2756_s1 }
  0x9f   : > { %p2086_p12 = scmp.ne.s32.totalorder %s2084_s30, %s2085_s26  ;;  %p2092_p10 = scmp.lt.s32.totalorder %s2090_s8, %s2085_s26 }
  0xa1   : > { %p2088_p0 = pnand %p2086_p12, %p2397_p8  ;;  %p2093_p7 = por %p2092_p10, %p2091_p3 }
  0xa3   : > { %p2089_p1 = pneg %p2088_p0 }
  0xa5   : > { %p2094_p4 = pnand %p2093_p7, %p2089_p1 }
  0xa7   : > { %2097 = shalt.err (!%p2094_p4)
}
  0xa8   : > { %1825 = dma.hbm_to_vmem [thread:$0]  (!%p2381_p2), %s563_s20, 1024, %s565_s11, %s553_s13, %s2751_s4, %s2751_s4, %s2750_s6  }
  0xa9   : > { %576 = sbr.rel (%p2324_p11) target bundleno = 1365 (0x555), region = 68 }
  0xae   : > { %2158 = dma.done.wait (%p2306_p5), [#allocation3], 256  }
  0xaf   : > { %2160 = vsyncadd (%p2306_p5), [#allocation3], 4294967040 }
  0xb0   : > { %2162 = dma.done.wait (%p2306_p5), [#allocation6], 320  }
  0xb1   : > { %2164 = vsyncadd (%p2306_p5), [#allocation6], 4294966976  ;;  %s2760_s29 = sld [smem:[#allocation24_spill]]  ;;  %s593_s21 = sand.u32 1, %s2288_s25  }
  0xb2   : > { %s594_s12 = scalar_lea.sflag [#allocation9], %s593_s21 }
  0xb7   : > { %s2539_s4 = sand.u32 1, %s2760_s29  }
  0xb8   : > { %s1540_s6 = sshll.u32 %s2539_s4, 6 }
  0xb9   : > { %s2542_s14 = scalar_lea.vmem [#allocation8], %s1540_s6 }
  0xba   : > { %2166 = dma.done.wait (%p2306_p5), %s594_s12, 2048  }
  0xbb   : > { %2168 = vsyncadd (%p2306_p5), %s594_s12, 4294965248  ;;  %s2548_s19 = scalar_lea.vmem [#allocation10], %s1540_s6  ;;  %s614_s15 = scalar_lea.sflag [#allocation12], %s593_s21 }
  0xbc   : > { %s2550_s27 = scalar_lea.vmem [#allocation11], %s1540_s6 }
  0xbd   : > { %2170 = dma.done.wait (%p2306_p5), %s614_s15, 2048  }
  0xbe   : > { %2172 = vsyncadd (%p2306_p5), %s614_s15, 4294965248  ;;  %s2556_s11 = scalar_lea.vmem [#allocation13], %s1540_s6  ;;  %s634_s20 = scalar_lea.sflag [#allocation15], %s2539_s4 }
  0xbf   : > { %s2559_s22 = scalar_lea.vmem [#allocation14], %s1540_s6 }
  0xc0   : > { %2174 = dma.done.wait (%p2306_p5), %s634_s20, 1024  }
  0xc1   : > { %2176 = vsyncadd (%p2306_p5), %s634_s20, 4294966272  ;;  %v1741_v0 = vld [vmem:[#allocation5 + $0x8] sm:$0xff]  ;;  %v1740_v2 = vld [vmem:[#allocation5] sm:$0xff]  ;;  %vm788_vm0 = vcmask 261120   ;;  %p711_p5 = scmp.lt.s32.totalorder %s2288_s25, 1  ;;  %s2761_s28 = sld [smem:[#allocation33_spill]] }
  0xc2   : > { %v1749_v1 = vld [vmem:[%s2542_s14 + $0x38] sm:$0xff]  ;;  %801 = vmatpush.bf16.msra.mxu0 %v1741_v0  ;;  %v1748_v3 = vld [vmem:[%s2542_s14 + $0x30] sm:$0xff]  ;;  %v1747_v5 = vld [vmem:[%s2542_s14 + $0x28] sm:$0xff]  ;;  %s2762_s18 = sld [smem:[#allocation34_spill]]  ;;  %s1728_s8 = sshll.u32 %s2288_s25, 3 }
  0xc3   : > { %867 = vmatpush.bf16.msra.mxu1 %v1749_v1  ;;  %v2567_v4 = vld [vmem:[#allocation2] sm:$0xff]  ;;  %v2574_v8 = vld [vmem:[#allocation2 + $0x8] sm:$0xff]  ;;  %s2580_s13 = scalar_select %p711_p5, %s2288_s25, 1  ;;  %v1744_v9 = vld [vmem:[%s2542_s14 + $0x10] sm:$0xff] }
  0xc4   : > { %v1746_v6 = vld [vmem:[%s2542_s14 + $0x20] sm:$0xff]  ;;  %v1745_v7 = vld [vmem:[%s2542_s14 + $0x18] sm:$0xff]  ;;  %v1743_v10 = vld [vmem:[%s2542_s14 + $0x8] sm:$0xff]  ;;  %s2763_s12 = sld [smem:[#allocation35_spill]]  ;;  %s1545_s17 = sshll.u32 %s2539_s4, 3 }
  0xc5   : > { %v1742_v11 = vld [vmem:[%s2542_s14] sm:$0xff]  ;;  %v1757_v12 = vld [vmem:[%s2548_s19 + $0x38] sm:$0xff]  ;;  %v1756_v13 = vld [vmem:[%s2548_s19 + $0x30] sm:$0xff]  ;;  %s2766_s16 = sld [smem:[#allocation38_spill]]  ;;  %s710_s21 = scalar_lea.vmem [#allocation16], %s1545_s17 }
  0xc6   : > { %802 = vmatpush.bf16.msra.mxu0 %v1740_v2  ;;  %943 = vmatpush.bf16.msra.mxu2 %v1757_v12  ;;  %v1755_v15 = vld [vmem:[%s2548_s19 + $0x28] sm:$0xff]  ;;  %v1754_v16 = vld [vmem:[%s2548_s19 + $0x20] sm:$0xff]  ;;  %v1753_v22 = vld [vmem:[%s2548_s19 + $0x18] sm:$0xff]  ;;  %s1284_s6 = sshll.u32 %s710_s21, 4  ;;  %s1285_s6 = int_to_ptr.vmem [resolvable:$true] %s1284_s6 }
  0xc7   : > { %868 = vmatpush.bf16.msra.mxu1 %v1748_v3  ;;  %s713_s3 = scalar_lea.vmem %s2761_s28, %s2580_s13  ;;  %v1752_v23 = vld [vmem:[%s2548_s19 + $0x10] sm:$0xff]  ;;  %v1751_v24 = vld [vmem:[%s2548_s19 + $0x8] sm:$0xff]  ;;  %v1750_v25 = vld [vmem:[%s2548_s19] sm:$0xff] }
  0xc8   : > { %s716_s10 = scalar_lea.vmem %s2762_s18, %s2580_s13  ;;  %v1869_v27 = vld [vmem:[%s713_s3] ss:$0 sm:$0xff]  ;;  %v1764_v48 = vld [vmem:[%s2550_s27 + $0x30] sm:$0xff]  ;;  %v1763_v54 = vld [vmem:[%s2550_s27 + $0x28] sm:$0xff] }
  0xc9   : > { %1562 = vmatmul.msk.bf16.vlgmr.msra.gmra.mxu0 %vm788_vm0, %v2567_v4  ;;  %v1870_v44 = vld [vmem:[%s716_s10] ss:$0 sm:$0xff]  ;;  %v1762_v58 = vld [vmem:[%s2550_s27 + $0x20] sm:$0xff]  ;;  %v1760_v61 = vld [vmem:[%s2550_s27 + $0x10] sm:$0xff] }
  0xca   : > { %944 = vmatpush.bf16.msra.mxu2 %v1756_v13  ;;  %v1765_v45 = vld [vmem:[%s2550_s27 + $0x38] sm:$0xff]  ;;  %s719_s14 = scalar_lea.vmem %s2763_s12, %s2580_s13  ;;  %v1759_v62 = vld [vmem:[%s2550_s27 + $0x8] sm:$0xff]  ;;  %v1758_v63 = vld [vmem:[%s2550_s27] sm:$0xff] }
  0xcb   : > { %869 = vmatpush.bf16.msra.mxu1 %v1747_v5  ;;  %1074 = vmatpush.bf16.msrb.mxu0 %v1765_v45  ;;  %v1761_v60 = vld [vmem:[%s2550_s27 + $0x18] sm:$0xff]  ;;  %v1772_v1 = vld [vmem:[%s2556_s11 + $0x30] sm:$0xff]  ;;  %v1771_v3 = vld [vmem:[%s2556_s11 + $0x28] sm:$0xff]  ;;  %s2764_s27 = sld [smem:[#allocation36_spill]]  ;;  %s1282_s29 = scalar_lea.hbm %s2766_s16, %s1728_s8 }
  0xcc   : > { %v1773_v0 = vld [vmem:[%s2556_s11 + $0x38] sm:$0xff]  ;;  %v1767_v12 = vld [vmem:[%s2556_s11 + $0x8] sm:$0xff]  ;;  %v1766_v13 = vld [vmem:[%s2556_s11] sm:$0xff]  ;;  %s2133_s30 = scalar_lea.hbm %s2766_s16, 16 }
  0xce   : > { %945 = vmatpush.bf16.msra.mxu2 %v1755_v15  ;;  %v1871_v15 = vld [vmem:[%s719_s14] ss:$0 sm:$0xff]  ;;  %s1286_s14 = sshll.u32 %s1282_s29, 4  ;;  %s1287_s14 = int_to_ptr.hbm [resolvable:$true] %s1286_s14 }
  0xcf   : > { %870 = vmatpush.bf16.msra.mxu1 %v1746_v6  ;;  %1075 = vmatpush.bf16.msrb.mxu0 %v1764_v48  ;;  %s2127_s19 = sshra.s32 %s1287_s14, 4  ;;  %s2128_s19 = int_to_ptr.hbm [resolvable:$true] %s2127_s19 }
  0xd0   : > { %s2129_s15 = scalar_lea.hbm %s2128_s19, 8  ;;  %p2134_p13 = scmp.lt.s32.totalorder %s2128_s19, %s2766_s16 }
  0xd1   : > { %s722_s20 = scalar_lea.vmem %s2764_s27, %s2580_s13  ;;  %p2130_p11 = scmp.ne.s32.totalorder %s2128_s19, %s2129_s15 }
  0xd2   : > { %946 = vmatpush.bf16.msra.mxu2 %v1754_v16  ;;  %p2135_p9 = scmp.lt.s32.totalorder %s2133_s30, %s2129_s15 }
  0xd3   : > { %871 = vmatpush.bf16.msra.mxu1 %v1745_v7  ;;  %1076 = vmatpush.bf16.msrb.mxu0 %v1763_v54  ;;  %p2131_p2 = pnand %p2130_p11, %p2313_p6 }
  0xd4   : > { %p2136_p12 = por %p2135_p9, %p2134_p13 }
  0xd5   : > { %p2132_p8 = pneg %p2131_p2 }
  0xd6   : > { %947 = vmatpush.bf16.msra.mxu2 %v1753_v22 }
  0xd7   : > { %872 = vmatpush.bf16.msra.mxu1 %v1744_v9  ;;  %1077 = vmatpush.bf16.msrb.mxu0 %v1762_v58  ;;  %p2137_p0 = pnand %p2136_p12, %p2132_p8 }
  0xd9   : > { %1563 = vmatmul.msk.bf16.gmra.mxu0 %vm788_vm0, %v2574_v8 }
  0xda   : > { %948 = vmatpush.bf16.msra.mxu2 %v1752_v23 }
  0xdb   : > { %873 = vmatpush.bf16.msra.mxu1 %v1743_v10  ;;  %1078 = vmatpush.bf16.msrb.mxu0 %v1761_v60  ;;  %v1769_v10 = vld [vmem:[%s2556_s11 + $0x18] sm:$0xff] }
  0xde   : > { %949 = vmatpush.bf16.msra.mxu2 %v1751_v24 }
  0xdf   : > { %874 = vmatpush.bf16.msra.mxu1 %v1742_v11  ;;  %1079 = vmatpush.bf16.msrb.mxu0 %v1760_v61  ;;  %v1768_v11 = vld [vmem:[%s2556_s11 + $0x10] sm:$0xff] }
  0xe2   : > { %950 = vmatpush.bf16.msra.mxu2 %v1750_v25 }
  0xe3   : > { %1080 = vmatpush.bf16.msrb.mxu0 %v1759_v62 }
  0xe7   : > { %1081 = vmatpush.bf16.msrb.mxu0 %v1758_v63 }
 0x146   : > { %v804_v14 = vpop.f32.mrf.mxu0 }
 0x14e   : > { %v806_v17 = vpop.f32.mrf.mxu0 }
 0x14f   : > { %v814_v18 = vpack.c.bf16 %v806_v17, %v804_v14 }
 0x151   : > { %875 = vmatmul.bf16.vlgmr.msra.gmra.mxu1 %v814_v18 }
 0x156   : > { %v809_v19 = vpop.f32.mrf.mxu0 }
 0x15e   : > { %v811_v20 = vpop.f32.mrf.mxu0 }
 0x15f   : > { %v815_v21 = vpack.c.bf16 %v811_v20, %v809_v19 }
 0x161   : > { %880 = vmatmul.bf16.gmra.mxu1 %v815_v21 }
 0x1ce   : > { %v876_v26 = vpop.f32.mrf.mxu1 }
 0x1cf   : > { %v877_v28 = vadd.f32 %v1869_v27, %v876_v26 }
 0x1d1   : > { %v886_v31 = vmax.f32 %v877_v28, 0.0 }
 0x1d6   : > { %v878_v29 = vpop.f32.mrf.mxu1 }
 0x1d7   : > { %v879_v30 = vadd.f32 %v1869_v27, %v878_v29 }
 0x1d9   : > { %v887_v32 = vmax.f32 %v879_v30, 0.0  ;;  %v1781_v30 = vld [vmem:[%s2559_s22 + $0x38] sm:$0xff] }
 0x1da   : > { %1257 = vmatpush.bf16.msrb.mxu2 %v1781_v30 }
 0x1db   : > { %v890_v33 = vpack.c.bf16 %v887_v32, %v886_v31  ;;  %v1780_v32 = vld [vmem:[%s2559_s22 + $0x30] sm:$0xff] }
 0x1dd   : > { %951 = vmatmul.bf16.vlgmr.msra.gmra.mxu2 %v890_v33  ;;  %v1779_v33 = vld [vmem:[%s2559_s22 + $0x28] sm:$0xff] }
 0x1de   : > { %v881_v34 = vpop.f32.mrf.mxu1  ;;  %1258 = vmatpush.bf16.msrb.mxu2 %v1780_v32 }
 0x1df   : > { %v882_v35 = vadd.f32 %v1869_v27, %v881_v34 }
 0x1e1   : > { %v888_v38 = vmax.f32 %v882_v35, 0.0  ;;  %v1778_v35 = vld [vmem:[%s2559_s22 + $0x20] sm:$0xff] }
 0x1e2   : > { %1259 = vmatpush.bf16.msrb.mxu2 %v1779_v33 }
 0x1e6   : > { %v883_v36 = vpop.f32.mrf.mxu1  ;;  %1260 = vmatpush.bf16.msrb.mxu2 %v1778_v35 }
 0x1e7   : > { %v884_v37 = vadd.f32 %v1869_v27, %v883_v36  ;;  %v1777_v36 = vld [vmem:[%s2559_s22 + $0x18] sm:$0xff] }
 0x1e9   : > { %v889_v39 = vmax.f32 %v884_v37, 0.0  ;;  %v1872_v37 = vld [vmem:[%s722_s20] ss:$0 sm:$0xff] }
 0x1ea   : > { %1261 = vmatpush.bf16.msrb.mxu2 %v1777_v36 }
 0x1eb   : > { %v891_v40 = vpack.c.bf16 %v889_v39, %v888_v38 }
 0x1ed   : > { %956 = vmatmul.bf16.gmra.mxu2 %v891_v40  ;;  %v1776_v40 = vld [vmem:[%s2559_s22 + $0x10] sm:$0xff] }
 0x1ee   : > { %1262 = vmatpush.bf16.msrb.mxu2 %v1776_v40 }
 0x260   : > { %v952_v41 = vpop.f32.mrf.mxu2 }
 0x261   : > { %v953_v51 = vadd.f32 %v1870_v44, %v952_v41 }
 0x263   : > { %v962_v57 = vmax.f32 %v953_v51, 0.0  ;;  %v1175_v51 = vld [vmem:[#allocation7] sm:$0xf] }
 0x268   : > { %v954_v42 = vpop.f32.mrf.mxu2 }
 0x269   : > { %v955_v49 = vadd.f32 %v1870_v44, %v954_v42 }
 0x26b   : > { %v963_v55 = vmax.f32 %v955_v49, 0.0 }
 0x26d   : > { %v966_v59 = vpack.c.bf16 %v963_v55, %v962_v57 }
 0x270   : > { %v957_v43 = vpop.f32.mrf.mxu2 }
 0x271   : > { %v958_v46 = vadd.f32 %v1870_v44, %v957_v43 }
 0x273   : > { %v964_v52 = vmax.f32 %v958_v46, 0.0  ;;  %v1775_v46 = vld [vmem:[%s2559_s22 + $0x8] sm:$0xff] }
 0x274   : > { %1263 = vmatpush.bf16.msrb.mxu2 %v1775_v46 }
 0x278   : > { %v959_v47 = vpop.f32.mrf.mxu2 }
 0x279   : > { %v960_v50 = vadd.f32 %v1870_v44, %v959_v47 }
 0x27b   : > { %v965_v53 = vmax.f32 %v960_v50, 0.0 }
 0x27d   : > { %v967_v56 = vpack.c.bf16 %v965_v53, %v964_v52  ;;  %v1774_v52 = vld [vmem:[%s2559_s22] sm:$0xff]  ;;  %s1272_s22 = scalar_lea.sflag [#allocation4], %s2539_s4 }
 0x27e   : > { %1264 = vmatpush.bf16.msrb.mxu2 %v1774_v52 }
 0x27f   : > { %1008 = vmatpush.bf16.msra.mxu3 %v967_v56 }
 0x283   : > { %1009 = vmatpush.bf16.msra.mxu3 %v966_v59 }
 0x286   : > { %1628 = vmatmul.msk.bf16.vlgmr.msra.gmra.mxu3 %vm788_vm0, %v2567_v4  ;;  %v1770_v4 = vld [vmem:[%s2556_s11 + $0x20] sm:$0xff] }
 0x287   : > { %1150 = vmatpush.bf16.msrb.mxu3 %v1773_v0 }
 0x28b   : > { %1151 = vmatpush.bf16.msrb.mxu3 %v1772_v1 }
 0x28f   : > { %1152 = vmatpush.bf16.msrb.mxu3 %v1771_v3 }
 0x293   : > { %1153 = vmatpush.bf16.msrb.mxu3 %v1770_v4 }
 0x296   : > { %1629 = vmatmul.msk.bf16.gmra.mxu3 %vm788_vm0, %v2574_v8 }
 0x297   : > { %1154 = vmatpush.bf16.msrb.mxu3 %v1769_v10 }
 0x29b   : > { %1155 = vmatpush.bf16.msrb.mxu3 %v1768_v11 }
 0x29f   : > { %1156 = vmatpush.bf16.msrb.mxu3 %v1767_v12 }
 0x2a3   : > { %1157 = vmatpush.bf16.msrb.mxu3 %v1766_v13 }
 0x309   : > { %v1011_v2 = vpop.f32.mrf.mxu3 }
 0x311   : > { %v1013_v5 = vpop.f32.mrf.mxu3 }
 0x312   : > { %v1021_v6 = vpack.c.bf16 %v1013_v5, %v1011_v2 }
 0x314   : > { %1082 = vmatmul.bf16.vlgmr.msrb.gmra.mxu0 %v1021_v6 }
 0x319   : > { %v1016_v7 = vpop.f32.mrf.mxu3 }
 0x321   : > { %v1018_v8 = vpop.f32.mrf.mxu3 }
 0x322   : > { %v1022_v9 = vpack.c.bf16 %v1018_v8, %v1016_v7 }
 0x324   : > { %1087 = vmatmul.bf16.gmra.mxu0 %v1022_v9 }
 0x391   : > { %v1083_v14 = vpop.f32.mrf.mxu0 }
 0x392   : > { %v1084_v16 = vadd.f32 %v1871_v15, %v1083_v14 }
 0x394   : > { %v1093_v19 = vmax.f32 %v1084_v16, 0.0 }
 0x399   : > { %v1085_v17 = vpop.f32.mrf.mxu0 }
 0x39a   : > { %v1086_v18 = vadd.f32 %v1871_v15, %v1085_v17 }
 0x39c   : > { %v1094_v20 = vmax.f32 %v1086_v18, 0.0 }
 0x39e   : > { %v1097_v21 = vpack.c.bf16 %v1094_v20, %v1093_v19 }
 0x3a0   : > { %1158 = vmatmul.bf16.vlgmr.msrb.gmra.mxu3 %v1097_v21 }
 0x3a1   : > { %v1088_v22 = vpop.f32.mrf.mxu0 }
 0x3a2   : > { %v1089_v23 = vadd.f32 %v1871_v15, %v1088_v22 }
 0x3a4   : > { %v1095_v26 = vmax.f32 %v1089_v23, 0.0 }
 0x3a9   : > { %v1090_v24 = vpop.f32.mrf.mxu0 }
 0x3aa   : > { %v1091_v25 = vadd.f32 %v1871_v15, %v1090_v24 }
 0x3ac   : > { %v1096_v27 = vmax.f32 %v1091_v25, 0.0 }
 0x3ae   : > { %v1098_v28 = vpack.c.bf16 %v1096_v27, %v1095_v26 }
 0x3b0   : > { %1163 = vmatmul.bf16.gmra.mxu3 %v1098_v28 }
 0x423   : > { %v1159_v29 = vpop.f32.mrf.mxu3 }
 0x424   : > { %v1160_v43 = vadd.f32 %v1872_v37, %v1159_v29 }
 0x426   : > { %v1169_v49 = vmax.f32 %v1160_v43, 0.0 }
 0x42b   : > { %v1161_v31 = vpop.f32.mrf.mxu3 }
 0x42c   : > { %v1162_v41 = vadd.f32 %v1872_v37, %v1161_v31 }
 0x42e   : > { %v1170_v47 = vmax.f32 %v1162_v41, 0.0 }
 0x430   : > { %v1173_v50 = vpack.c.bf16 %v1170_v47, %v1169_v49 }
 0x433   : > { %v1164_v34 = vpop.f32.mrf.mxu3 }
 0x434   : > { %v1165_v38 = vadd.f32 %v1872_v37, %v1164_v34 }
 0x436   : > { %v1171_v44 = vmax.f32 %v1165_v38, 0.0 }
 0x43b   : > { %v1166_v39 = vpop.f32.mrf.mxu3 }
 0x43c   : > { %v1167_v42 = vadd.f32 %v1872_v37, %v1166_v39 }
 0x43e   : > { %v1172_v45 = vmax.f32 %v1167_v42, 0.0 }
 0x440   : > { %v1174_v48 = vpack.c.bf16 %v1172_v45, %v1171_v44 }
 0x442   : > { %1185 = vmatpush.bf16.msrb.mxu1 %v1174_v48 }
 0x446   : > { %1186 = vmatpush.bf16.msrb.mxu1 %v1173_v50 }
 0x449   : > { %1694 = vmatmul.msk.bf16.vlgmr.msrb.gmra.mxu1 %vm788_vm0, %v1175_v51 }
 0x4c6   : > { %v1188_v53 = vpop.f32.mrf.mxu1 }
 0x4c7   : > { %v1192_v54 = vpack.c.bf16 %v1188_v53, %v1188_v53 }
 0x4c9   : > { %1265 = vmatmul.bf16.vlgmr.msrb.gmra.mxu2 %v1192_v54 }
 0x4ce   : > { %v1190_v55 = vpop.f32.mrf.mxu1 }
 0x54c   : > { %v1266_v56 = vpop.f32.mrf.mxu2 }
 0x54d   : > { %1270 = vst [vmem:[%s710_s21] sm:$0xff] %v1266_v56 }
 0x54e   : > { %2140 = shalt.err (!%p2137_p0)
}
 0x54f   : > { %1798 = dma.vmem_to_hbm [thread:$0]  (%p2313_p6), %s1285_s6, 128, %s1287_s14, %s1272_s22  }
 0x554   : > { %v1268_v57 = vpop.f32.mrf.mxu2 }
 0x555 PF: > { %s2767_s4 = sld [smem:[#allocation23_spill]]  ;;  %p2770_p3 = scmp.ge.s32.totalorder %s2195_s24, 2 }
 0x556   : > { %s2768_s3 = sld [smem:[#allocation29_spill]] }
 0x55b   : > { %s1298_s8 = sand.u32 1, %s2767_s4  }
 0x55c   : > { %p2769_p1 = scmp.ne.s32.totalorder %s2768_s3, 0  ;;  %s1299_s17 = scalar_lea.sflag [#allocation4], %s1298_s8 }
 0x55e   : > { %p1827_p10 = pnand %p2770_p3, %p2769_p1 }
 0x560   : > { %p1828_p7 = pneg %p1827_p10 }
 0x562   : > { %2178 = dma.done.wait (%p1828_p7), %s1299_s17, 128  }
 0x563   : > { %2180 = vsyncadd (%p1828_p7), %s1299_s17, 4294967168  ;;  %s2771_s24 = sld [smem:[#allocation25_spill]]  ;;  %s2774_s22 = smov %s2191_s23 }
 0x564   : > { %s2772_s21 = sld [smem:[#allocation24_spill]] }
 0x565   : > { %s2773_s18 = sld [smem:[#allocation26_spill]] }
 0x569   : > { %p33_p4 = scmp.ge.s32.totalorder %s2771_s24, 4  }
 0x56b   : > { %s2775_s23 = smov %s2773_s18  ;;  %35 = sbr.rel (!%p33_p4) target bundleno = 20 (0x14), region = 189 }
 0x570   :  { %1305 = vsyncpa [#allocation3], 1 }
 0x571   :  { %1307 = vsyncpa [#allocation3 + $0x1], 1 }
 0x572   :  { %1308 = vsyncpa [#allocation6], 1 }
 0x573   :  { %1309 = vsyncpa [#allocation9], 1 }
 0x574   :  { %1311 = vsyncpa [#allocation9 + $0x1], 1 }
 0x575   :  { %1312 = vsyncpa [#allocation12], 1 }
 0x576   :  { %1314 = vsyncpa [#allocation12 + $0x1], 1 }
 0x577   :  { %1315 = vsyncpa [#allocation15], 1 }
 0x578   :  { %1317 = vsyncpa [#allocation15 + $0x1], 1 }
 0x579   :  { %1318 = vsyncpa [#allocation4], 1 }
 0x57a   :  { %1320 = vsyncpa [#allocation4 + $0x1], 1 }

// kernel: tpu_custom_call.1
= control target key start
LH: loop header
LB: loop body
LE: loop exit
PB: predicated region body
PF: predicated region fallthrough
CT: control target
= control target key end

     0   :  { %s2762_s0 = inlined_call_operand.hbm [shape: bf16[2,32,32], index: 0, kind: input, shape index: {}]   ;;  %s2763_s1 = inlined_call_operand.hbm [shape: bf16[2,32,128], index: 1, kind: input, shape index: {}]   ;;  %s2764_s2 = inlined_call_operand.hbm [shape: bf16[2,8,32], index: 2, kind: input, shape index: {}]   ;;  %s2765_s3 = inlined_call_operand.hbm [shape: bf16[2,128,128], index: 3, kind: input, shape index: {}]   ;;  %s2766_s4 = inlined_call_operand.vmem [shape: f32[2,1,128], index: 4, kind: input, shape index: {}]   ;;  %s2767_s5 = inlined_call_operand.hbm [shape: bf16[2,128,128], index: 5, kind: input, shape index: {}]   ;;  %s2768_s6 = inlined_call_operand.vmem [shape: f32[2,1,128], index: 6, kind: input, shape index: {}]   ;;  %s2769_s7 = inlined_call_operand.hbm [shape: bf16[2,1,128,128], index: 7, kind: input, shape index: {}]   ;;  %s2770_s8 = inlined_call_operand.vmem [shape: f32[2,1,1,128], index: 8, kind: input, shape index: {}]   ;;  %s2771_s9 = inlined_call_operand.hbm [shape: bf16[2,1,128,128], index: 9, kind: input, shape index: {}]   ;;  %s2772_s10 = inlined_call_operand.vmem [shape: f32[2,1,1,128], index: 10, kind: input, shape index: {}]   ;;  %s2773_s11 = inlined_call_operand.hbm [shape: bf16[2,128,128], index: 11, kind: input, shape index: {}]   ;;  %s2774_s12 = inlined_call_operand.hbm [shape: f32[2,8,128], index: 12, kind: output, shape index: {}]  }
   0x1   :  { %2798 = sst [smem:[#allocation31_spill]] %s2763_s1 }
   0x2   :  { %2799 = sst [smem:[#allocation32_spill]] %s2765_s3 }
   0x3   :  { %2800 = sst [smem:[#allocation33_spill]] %s2766_s4 }
   0x4   :  { %2801 = sst [smem:[#allocation34_spill]] %s2768_s6 }
   0x5   :  { %2802 = sst [smem:[#allocation35_spill]] %s2769_s7 }
   0x6   :  { %2803 = sst [smem:[#allocation36_spill]] %s2770_s8 }
   0x7   :  { %2804 = sst [smem:[#allocation37_spill]] %s2772_s10 }
   0x8   :  { %2805 = sst [smem:[#allocation38_spill]] %s2774_s12 }
   0x9   :  { %17 = vsyncpa [#allocation3], 0 }
   0xa   :  { %19 = vsyncpa [#allocation3 + $0x1], 0 }
   0xb   :  { %20 = vsyncpa [#allocation6], 0 }
   0xc   :  { %22 = vsyncpa [#allocation6 + $0x1], 0 }
   0xd   :  { %23 = vsyncpa [#allocation9], 0 }
   0xe   :  { %25 = vsyncpa [#allocation9 + $0x1], 0 }
   0xf   :  { %26 = vsyncpa [#allocation12], 0 }
  0x10   :  { %28 = vsyncpa [#allocation12 + $0x1], 0 }
  0x11   :  { %29 = vsyncpa [#allocation15], 0 }
  0x12   :  { %31 = vsyncpa [#allocation15 + $0x1], 0 }
  0x13   :  { %32 = vsyncpa [#allocation4], 0 }
  0x14   :  { %34 = vsyncpa [#allocation4 + $0x1], 0  ;;  %s2344_s21 = smov 0   ;;  %s2346_s22 = smov 0  }
  0x15   :  { %s2348_s23 = smov 0   ;;  %s2350_s24 = smov 0  }
  0x16 LB: > { %2806 = sst [smem:[#allocation23_spill]] %s2263_s21  ;;  %s2365_s25 = sadd.s32 4294967295, %s2275_s24   ;;  %s2275_s24 = sphi %s2350_s24, %s2841_s24   ;;  %s2271_s23 = sphi %s2348_s23, %s2843_s23   ;;  %s2267_s22 = sphi %s2346_s22, %s2845_s22   ;;  %s2263_s21 = sphi %s2344_s21, %s2844_s21  }
  0x17   : > { %2807 = sst [smem:[#allocation24_spill]] %s2271_s23  ;;  %s1594_s26 = sadd.s32 4294967294, %s2275_s24  }
  0x18   : > { %2808 = sst [smem:[#allocation25_spill]] %s2365_s25  ;;  %s2369_s27 = sadd.s32 1, %s2275_s24  }
  0x19   : > { %2809 = sst [smem:[#allocation26_spill]] %s2369_s27  ;;  %s47_s28 = sadd.s32 1, %s2271_s23 }
  0x1a   : > { %s44_s29 = ssub.s32 %s2275_s24, %s2369_s27  ;;  %p54_p0 = scmp.ne.s32.totalorder %s2271_s23, %s2267_s22 }
  0x1b   : > { %p45_p1 = scmp.eq.s32.totalorder %s44_s29, 0  ;;  %p55_p2 = scmp.eq.s32.totalorder %s2275_s24, 0 }
  0x1c   : > { %p60_p3 = scmp.ne.s32.totalorder %s2267_s22, %s2263_s21  ;;  %p61_p4 = scmp.eq.s32.totalorder %s2365_s25, 0 }
  0x1d   : > { %s2381_s30 = scalar_select %p45_p1, %s2271_s23, %s47_s28  }
  0x1e   : > { %p56_p5 = por %p55_p2, %p54_p0  ;;  %p2383_p6 = por %p61_p4, %p60_p3 }
  0x1f   : > { %2810 = sst [smem:[#allocation27_spill]] %s2381_s30  ;;  %p370_p7 = scmp.eq.s32.totalorder %s2365_s25, 1 }
  0x20   : > { %s2811_s13 = scalar_select %p2383_p6, 1, 0 }
  0x21   : > { %p376_p8 = scmp.eq.s32.totalorder %s1594_s26, 1  ;;  %p1596_p9 = scmp.ge.s32.totalorder %s2275_s24, 2 }
  0x22   : > { %2812 = sst [smem:[#allocation28_spill]] %s2811_s13  ;;  %p1913_p10 = scmp.lt.s32.totalorder %s2275_s24, 2 }
  0x23   : > { %p2390_p11 = por %p370_p7, %p54_p0  ;;  %p2394_p12 = por %p376_p8, %p60_p3 }
  0x24   : > { %s2399_s16 = sand.u32 1, %s2271_s23   ;;  %s2784_s17 = sshll.u32 %s2275_s24, 4 }
  0x25   : > { %s2813_s14 = scalar_select %p2390_p11, 1, 0 }
  0x26   : > { %s2815_s15 = scalar_select %p2394_p12, 1, 0 }
  0x27   : > { %2814 = sst [smem:[#allocation29_spill]] %s2813_s14  ;;  %s2783_s18 = sshll.u32 %s2399_s16, 4 }
  0x28   : > { %2816 = sst [smem:[#allocation30_spill]] %s2815_s15  ;;  %p2403_p13 = pnand %p1913_p10, %p56_p5 }
  0x29   : > { %s2408_s20 = sand.u32 1, %s2275_s24   ;;  %s2818_s1 = sld [smem:[#allocation31_spill]] }
  0x2a   : > { %s422_s30 = scalar_lea.vmem [#allocation5], %s2783_s18  ;;  %p1620_p0 = scmp.ge.s32.totalorder %s2275_s24, 1 }
  0x2b   : > { %s430_s23 = sshll.u32 %s422_s30, 4  ;;  %p2421_p2 = pneg %p2403_p13  ;;  %s431_s23 = int_to_ptr.vmem [resolvable:$true] %s430_s23 }
  0x2f   : > { %s427_s29 = scalar_lea.hbm %s2818_s1, %s2784_s17  ;;  %s1960_s28 = scalar_lea.hbm %s2818_s1, 32 }
  0x30   : > { %s428_s27 = sshll.u32 %s427_s29, 4  ;;  %s429_s27 = int_to_ptr.hbm [resolvable:$true] %s428_s27 }
  0x31   : > { %s1953_s21 = sshra.s32 %s429_s27, 4  ;;  %s1954_s21 = int_to_ptr.hbm [resolvable:$true] %s1953_s21 }
  0x32   : > { %s1955_s12 = scalar_lea.hbm %s1954_s21, 16  ;;  %p1961_p5 = scmp.lt.s32.totalorder %s1954_s21, %s2818_s1 }
  0x33   : > { %p1956_p1 = scmp.ne.s32.totalorder %s1954_s21, %s1955_s12  ;;  %p1962_p7 = scmp.lt.s32.totalorder %s1960_s28, %s1955_s12 }
  0x35   : > { %p1958_p3 = pnand %p2421_p2, %p1956_p1  ;;  %p1963_p8 = por %p1962_p7, %p1961_p5 }
  0x37   : > { %p1959_p4 = pneg %p1958_p3 }
  0x39   : > { %p1964_p10 = pnand %p1963_p8, %p1959_p4 }
  0x3b   : > { %1967 = shalt.err (!%p1964_p10)
}
  0x3c   : > { %s2786_s17 = smov 64   ;;  %s2788_s15 = smov 4  }
  0x3d   : > { %s2820_s26 = scalar_lea.sflag [#allocation6], %s2408_s20  ;;  %p591_p1 = scmp.lt.s32.totalorder %s2275_s24, 3 }
  0x3e   : > { %1890 = dma.hbm_to_vmem [thread:$0]  (!%p2403_p13), %s429_s27, 256, %s431_s23, %s2820_s26, %s2786_s17, %s2786_s17, %s2788_s15  }
  0x3f   : > { %s2442_s12 = sshll.u32 %s2399_s16, 6  ;;  %s2445_s21 = sshll.u32 %s2275_s24, 6 }
  0x40   : > { %p2449_p3 = pnand %p1620_p0, %p591_p1  ;;  %s2822_s3 = sld [smem:[#allocation32_spill]] }
  0x41   : > { %s463_s1 = scalar_lea.vmem [#allocation8], %s2442_s12  ;;  %s2796_s27 = scalar_lea.sflag [#allocation9], %s2408_s20 }
  0x42   : > { %s471_s10 = sshll.u32 %s463_s1, 4  ;;  %s472_s10 = int_to_ptr.vmem [resolvable:$true] %s471_s10 }
  0x46   : > { %s468_s29 = scalar_lea.hbm %s2822_s3, %s2445_s21  ;;  %s1990_s6 = scalar_lea.hbm %s2822_s3, 128 }
  0x47   : > { %s469_s23 = sshll.u32 %s468_s29, 4  ;;  %s470_s23 = int_to_ptr.hbm [resolvable:$true] %s469_s23 }
  0x48   : > { %s1983_s26 = sshra.s32 %s470_s23, 4  ;;  %s1984_s26 = int_to_ptr.hbm [resolvable:$true] %s1983_s26 }
  0x49   : > { %s1985_s17 = scalar_lea.hbm %s1984_s26, 64  ;;  %p1991_p7 = scmp.lt.s32.totalorder %s1984_s26, %s2822_s3 }
  0x4a   : > { %p1986_p4 = scmp.ne.s32.totalorder %s1984_s26, %s1985_s17  ;;  %p1992_p8 = scmp.lt.s32.totalorder %s1990_s6, %s1985_s17 }
  0x4c   : > { %p1988_p5 = pnand %p1986_p4, %p2421_p2  ;;  %p1993_p10 = por %p1992_p8, %p1991_p7 }
  0x4e   : > { %p1989_p0 = pneg %p1988_p5 }
  0x50   : > { %p1994_p1 = pnand %p1993_p10, %p1989_p0 }
  0x52   : > { %1997 = shalt.err (!%p1994_p1)
}
  0x53   : > { %s2823_s1 = smov 4   ;;  %s2824_s28 = smov 64  }
  0x54   : > { %1896 = dma.hbm_to_vmem [thread:$0]  (!%p2403_p13), %s470_s23, 1024, %s472_s10, %s2796_s27, %s2824_s28, %s2824_s28, %s2823_s1  }
  0x55   : > { %s2825_s7 = sld [smem:[#allocation35_spill]]  ;;  %s519_s17 = scalar_lea.vmem [#allocation11], %s2442_s12 }
  0x56   : > { %s527_s29 = sshll.u32 %s519_s17, 4  ;;  %s2797_s26 = scalar_lea.sflag [#allocation12], %s2408_s20  ;;  %s528_s29 = int_to_ptr.vmem [resolvable:$true] %s527_s29 }
  0x5b   : > { %s524_s4 = scalar_lea.hbm %s2825_s7, %s2445_s21  ;;  %s2020_s10 = scalar_lea.hbm %s2825_s7, 128 }
  0x5c   : > { %s525_s6 = sshll.u32 %s524_s4, 4  ;;  %s526_s6 = int_to_ptr.hbm [resolvable:$true] %s525_s6 }
  0x5d   : > { %s2013_s30 = sshra.s32 %s526_s6, 4  ;;  %s2014_s30 = int_to_ptr.hbm [resolvable:$true] %s2013_s30 }
  0x5e   : > { %s2015_s3 = scalar_lea.hbm %s2014_s30, 64  ;;  %p2021_p7 = scmp.lt.s32.totalorder %s2014_s30, %s2825_s7 }
  0x5f   : > { %p2016_p4 = scmp.ne.s32.totalorder %s2014_s30, %s2015_s3  ;;  %p2022_p8 = scmp.lt.s32.totalorder %s2020_s10, %s2015_s3 }
  0x61   : > { %p2018_p5 = pnand %p2016_p4, %p2421_p2  ;;  %p2023_p10 = por %p2022_p8, %p2021_p7 }
  0x63   : > { %p2019_p0 = pneg %p2018_p5 }
  0x65   : > { %p2024_p1 = pnand %p2023_p10, %p2019_p0 }
  0x67   : > { %2027 = shalt.err (!%p2024_p1)
}
  0x68   : > { %1902 = dma.hbm_to_vmem [thread:$0]  (!%p2403_p13), %s526_s6, 1024, %s528_s29, %s2797_s26, %s2824_s28, %s2824_s28, %s2823_s1  }
  0x69   : > { %s2826_s25 = sshll.u32 %s2275_s24, 4  ;;  %s2827_s4 = sshll.u32 %s2399_s16, 4 }
  0x6a   : > { %s405_s3 = scalar_lea.hbm %s2762_s0, %s2826_s25  ;;  %s400_s17 = scalar_lea.vmem [#allocation2], %s2827_s4 }
  0x6b   : > { %s408_s30 = sshll.u32 %s400_s17, 4  ;;  %s406_s10 = sshll.u32 %s405_s3, 4  ;;  %s409_s30 = int_to_ptr.vmem [resolvable:$true] %s408_s30  ;;  %s407_s10 = int_to_ptr.hbm [resolvable:$true] %s406_s10 }
  0x6c   : > { %s1603_s23 = sshll.u32 %s2399_s16, 2  ;;  %s397_s8 = scalar_lea.sflag [#allocation3], %s2399_s16 }
  0x6d   : > { %s2043_s27 = sshra.s32 %s407_s10, 4  ;;  %s2050_s13 = scalar_lea.hbm %s2762_s0, 32  ;;  %s2044_s27 = int_to_ptr.hbm [resolvable:$true] %s2043_s27 }
  0x6e   : > { %s2045_s7 = scalar_lea.hbm %s2044_s27, 16  ;;  %p2051_p7 = scmp.lt.s32.totalorder %s2044_s27, %s2762_s0 }
  0x6f   : > { %p2046_p4 = scmp.ne.s32.totalorder %s2044_s27, %s2045_s7  ;;  %p2052_p8 = scmp.lt.s32.totalorder %s2050_s13, %s2045_s7 }
  0x71   : > { %p2048_p5 = pnand %p2046_p4, %p2421_p2  ;;  %p2053_p10 = por %p2052_p8, %p2051_p7 }
  0x73   : > { %p2049_p0 = pneg %p2048_p5 }
  0x75   : > { %p2054_p1 = pnand %p2053_p10, %p2049_p0 }
  0x77   : > { %2057 = shalt.err (!%p2054_p1)
}
  0x78   : > { %1887 = dma.hbm_to_vmem [thread:$0]  (!%p2403_p13), %s407_s10, 256, %s409_s30, %s397_s8, %s2824_s28, %s2824_s28, %s2823_s1  }
  0x79   : > { %s1604_s3 = sshll.u32 %s2275_s24, 2  ;;  %s444_s29 = scalar_lea.vmem [#allocation7], %s1603_s23 }
  0x7a   : > { %s448_s6 = scalar_lea.hbm %s2764_s2, %s1604_s3  ;;  %s452_s25 = sshll.u32 %s444_s29, 4  ;;  %s453_s25 = int_to_ptr.vmem [resolvable:$true] %s452_s25 }
  0x7b   : > { %s450_s27 = sshll.u32 %s448_s6, 4  ;;  %s2080_s30 = scalar_lea.hbm %s2764_s2, 8  ;;  %s451_s27 = int_to_ptr.hbm [resolvable:$true] %s450_s27 }
  0x7c   : > { %s2073_s7 = sshra.s32 %s451_s27, 4  ;;  %s2074_s7 = int_to_ptr.hbm [resolvable:$true] %s2073_s7 }
  0x7d   : > { %s2075_s13 = scalar_lea.hbm %s2074_s7, 4  ;;  %p2081_p7 = scmp.lt.s32.totalorder %s2074_s7, %s2764_s2 }
  0x7e   : > { %p2076_p4 = scmp.ne.s32.totalorder %s2074_s7, %s2075_s13  ;;  %p2082_p8 = scmp.lt.s32.totalorder %s2080_s30, %s2075_s13 }
  0x80   : > { %p2078_p5 = pnand %p2076_p4, %p2421_p2  ;;  %p2083_p10 = por %p2082_p8, %p2081_p7 }
  0x82   : > { %p2079_p0 = pneg %p2078_p5 }
  0x84   : > { %p2084_p1 = pnand %p2083_p10, %p2079_p0 }
  0x86   : > { %2087 = shalt.err (!%p2084_p1)
}
  0x87   : > { %s2828_s23 = scalar_lea.sflag [#allocation6], %s2408_s20  ;;  %s496_s26 = scalar_lea.hbm %s2767_s5, %s2445_s21 }
  0x88   : > { %1893 = dma.hbm_to_vmem [thread:$0]  (!%p2403_p13), %s451_s27, 64, %s453_s25, %s2828_s23  }
  0x89   : > { %s491_s17 = scalar_lea.vmem [#allocation10], %s2442_s12  ;;  %s497_s29 = sshll.u32 %s496_s26, 4  ;;  %s498_s29 = int_to_ptr.hbm [resolvable:$true] %s497_s29 }
  0x8a   : > { %s499_s6 = sshll.u32 %s491_s17, 4  ;;  %s2103_s7 = sshra.s32 %s498_s29, 4  ;;  %s500_s6 = int_to_ptr.vmem [resolvable:$true] %s499_s6  ;;  %s2104_s7 = int_to_ptr.hbm [resolvable:$true] %s2103_s7 }
  0x8b   : > { %s2105_s13 = scalar_lea.hbm %s2104_s7, 64  ;;  %s2110_s25 = scalar_lea.hbm %s2767_s5, 128 }
  0x8c   : > { %p2106_p4 = scmp.ne.s32.totalorder %s2104_s7, %s2105_s13  ;;  %p2111_p7 = scmp.lt.s32.totalorder %s2104_s7, %s2767_s5 }
  0x8d   : > { %p2112_p8 = scmp.lt.s32.totalorder %s2110_s25, %s2105_s13 }
  0x8e   : > { %p2108_p5 = pnand %p2106_p4, %p2421_p2 }
  0x8f   : > { %p2113_p10 = por %p2112_p8, %p2111_p7 }
  0x90   : > { %p2109_p0 = pneg %p2108_p5 }
  0x92   : > { %p2114_p1 = pnand %p2113_p10, %p2109_p0 }
  0x94   : > { %2117 = shalt.err (!%p2114_p1)
}
  0x95   : > { %s2829_s8 = scalar_lea.sflag [#allocation9], %s2408_s20  ;;  %s552_s4 = scalar_lea.hbm %s2771_s9, %s2445_s21 }
  0x96   : > { %1899 = dma.hbm_to_vmem [thread:$0]  (!%p2403_p13), %s498_s29, 1024, %s500_s6, %s2829_s8, %s2824_s28, %s2824_s28, %s2823_s1  }
  0x97   : > { %s547_s26 = scalar_lea.vmem [#allocation13], %s2442_s12  ;;  %s553_s7 = sshll.u32 %s552_s4, 4  ;;  %s554_s7 = int_to_ptr.hbm [resolvable:$true] %s553_s7 }
  0x98   : > { %s555_s17 = sshll.u32 %s547_s26, 4  ;;  %s2133_s13 = sshra.s32 %s554_s7, 4  ;;  %s556_s17 = int_to_ptr.vmem [resolvable:$true] %s555_s17  ;;  %s2134_s13 = int_to_ptr.hbm [resolvable:$true] %s2133_s13 }
  0x99   : > { %s2135_s15 = scalar_lea.hbm %s2134_s13, 64  ;;  %s2140_s6 = scalar_lea.hbm %s2771_s9, 128 }
  0x9a   : > { %p2136_p4 = scmp.ne.s32.totalorder %s2134_s13, %s2135_s15  ;;  %p2141_p7 = scmp.lt.s32.totalorder %s2134_s13, %s2771_s9 }
  0x9b   : > { %p2142_p8 = scmp.lt.s32.totalorder %s2140_s6, %s2135_s15 }
  0x9c   : > { %p2138_p5 = pnand %p2136_p4, %p2421_p2 }
  0x9d   : > { %p2143_p10 = por %p2142_p8, %p2141_p7 }
  0x9e   : > { %p2139_p0 = pneg %p2138_p5 }
  0xa0   : > { %p2144_p1 = pnand %p2143_p10, %p2139_p0 }
  0xa2   : > { %2147 = shalt.err (!%p2144_p1)
}
  0xa3   : > { %s2830_s10 = scalar_lea.sflag [#allocation12], %s2408_s20  ;;  %s580_s3 = scalar_lea.hbm %s2773_s11, %s2445_s21 }
  0xa4   : > { %1905 = dma.hbm_to_vmem [thread:$0]  (!%p2403_p13), %s554_s7, 1024, %s556_s17, %s2830_s10, %s2824_s28, %s2824_s28, %s2823_s1  }
  0xa5   : > { %s581_s4 = sshll.u32 %s580_s3, 4  ;;  %s575_s26 = scalar_lea.vmem [#allocation14], %s2442_s12  ;;  %s582_s4 = int_to_ptr.hbm [resolvable:$true] %s581_s4 }
  0xa6   : > { %s583_s13 = sshll.u32 %s575_s26, 4  ;;  %s572_s15 = scalar_lea.sflag [#allocation15], %s2399_s16  ;;  %s584_s13 = int_to_ptr.vmem [resolvable:$true] %s583_s13 }
  0xa7   : > { %s2163_s30 = sshra.s32 %s582_s4, 4  ;;  %s2170_s17 = scalar_lea.hbm %s2773_s11, 128  ;;  %s2164_s30 = int_to_ptr.hbm [resolvable:$true] %s2163_s30 }
  0xa8   : > { %s2165_s25 = scalar_lea.hbm %s2164_s30, 64  ;;  %p2171_p7 = scmp.lt.s32.totalorder %s2164_s30, %s2773_s11 }
  0xa9   : > { %p2166_p4 = scmp.ne.s32.totalorder %s2164_s30, %s2165_s25  ;;  %p2172_p8 = scmp.lt.s32.totalorder %s2170_s17, %s2165_s25 }
  0xab   : > { %p2168_p5 = pnand %p2166_p4, %p2421_p2  ;;  %p2173_p10 = por %p2172_p8, %p2171_p7 }
  0xad   : > { %p2169_p0 = pneg %p2168_p5 }
  0xaf   : > { %p2174_p1 = pnand %p2173_p10, %p2169_p0 }
  0xb1   : > { %2177 = shalt.err (!%p2174_p1)
}
  0xb2   : > { %1908 = dma.hbm_to_vmem [thread:$0]  (!%p2403_p13), %s582_s4, 1024, %s584_s13, %s572_s15, %s2824_s28, %s2824_s28, %s2823_s1  }
  0xb3   : > { %595 = sbr.rel (%p2449_p3) target bundleno = 1376 (0x560), region = 68  ;;  %s2595_s16 = sand.u32 (!%p2449_p3), 1, %s2267_s22  }
  0xb4   : > { %s1621_s12 = sshll.u32 (!%p2449_p3), %s2595_s16, 4  ;;  %s598_s21 = scalar_lea.sflag (!%p2449_p3), [#allocation3], %s2595_s16 }
  0xb5   : > { %s2599_s27 = scalar_lea.vmem (!%p2449_p3), [#allocation2], %s1621_s12 }
  0xb8   : > { %2238 = dma.done.wait (%p2383_p6), %s598_s21, 256  }
  0xb9   : > { %2240 = vsyncadd (%p2383_p6), %s598_s21, 4294967040  ;;  %s2832_s19 = sld [smem:[#allocation25_spill]]  ;;  %s611_s28 = scalar_lea.vmem [#allocation5], %s1621_s12 }
  0xbf   : > { %s607_s1 = sand.u32 1, %s2832_s19  }
  0xc0   : > { %s608_s18 = scalar_lea.sflag [#allocation6], %s607_s1 }
  0xc1   : > { %2242 = dma.done.wait (%p2383_p6), %s608_s18, 320  }
  0xc2   : > { %2244 = vsyncadd (%p2383_p6), %s608_s18, 4294966976  ;;  %s1623_s10 = sshll.u32 %s2595_s16, 2  ;;  %s1624_s8 = sshll.u32 %s2595_s16, 6 }
  0xc3   : > { %s2612_s23 = scalar_lea.vmem [#allocation7], %s1623_s10  ;;  %s628_s3 = scalar_lea.sflag [#allocation9], %s607_s1 }
  0xc4   : > { %s2614_s4 = scalar_lea.vmem [#allocation8], %s1624_s8 }
  0xc5   : > { %2246 = dma.done.wait (%p2383_p6), %s628_s3, 2048  }
  0xc6   : > { %2248 = vsyncadd (%p2383_p6), %s628_s3, 4294965248  ;;  %s2620_s26 = scalar_lea.vmem [#allocation10], %s1624_s8  ;;  %s648_s13 = scalar_lea.sflag [#allocation12], %s607_s1 }
  0xc7   : > { %s2622_s15 = scalar_lea.vmem [#allocation11], %s1624_s8 }
  0xc8   : > { %2250 = dma.done.wait (%p2383_p6), %s648_s13, 2048  }
  0xc9   : > { %2252 = vsyncadd (%p2383_p6), %s648_s13, 4294965248  ;;  %s2628_s30 = scalar_lea.vmem [#allocation13], %s1624_s8  ;;  %s668_s25 = scalar_lea.sflag [#allocation15], %s2595_s16 }
  0xca   : > { %s2631_s20 = scalar_lea.vmem [#allocation14], %s1624_s8 }
  0xcb   : > { %2254 = dma.done.wait (%p2383_p6), %s668_s25, 1024  }
  0xcc   : > { %2256 = vsyncadd (%p2383_p6), %s668_s25, 4294966272  ;;  %v1825_v0 = vld [vmem:[%s611_s28 + $0x8] sm:$0xff]  ;;  %v1833_v1 = vld [vmem:[%s2614_s4 + $0x38] sm:$0xff]  ;;  %vm837_vm0 = vcmask 261120   ;;  %p760_p6 = scmp.lt.s32.totalorder %s2832_s19, 1  ;;  %s2833_s29 = sld [smem:[#allocation33_spill]] }
  0xcd   : > { %850 = vmatpush.bf16.msra.mxu0 %v1825_v0  ;;  %v1824_v2 = vld [vmem:[%s611_s28] sm:$0xff]  ;;  %916 = vmatpush.bf16.msra.mxu1 %v1833_v1  ;;  %v1832_v3 = vld [vmem:[%s2614_s4 + $0x30] sm:$0xff]  ;;  %v1830_v6 = vld [vmem:[%s2614_s4 + $0x20] sm:$0xff]  ;;  %s2835_s3 = sld [smem:[#allocation36_spill]]  ;;  %s1812_s12 = sshll.u32 %s2832_s19, 3 }
  0xce   : > { %v2640_v4 = vld [vmem:[%s2599_s27] sm:$0xff]  ;;  %v2648_v8 = vld [vmem:[%s2599_s27 + $0x8] sm:$0xff]  ;;  %s2654_s6 = scalar_select %p760_p6, %s2832_s19, 1 }
  0xcf   : > { %v1831_v5 = vld [vmem:[%s2614_s4 + $0x28] sm:$0xff]  ;;  %v1829_v7 = vld [vmem:[%s2614_s4 + $0x18] sm:$0xff]  ;;  %v1828_v9 = vld [vmem:[%s2614_s4 + $0x10] sm:$0xff]  ;;  %s2834_s27 = sld [smem:[#allocation34_spill]]  ;;  %s1629_s21 = sshll.u32 %s2595_s16, 3 }
  0xd0   : > { %v1827_v10 = vld [vmem:[%s2614_s4 + $0x8] sm:$0xff]  ;;  %v1826_v11 = vld [vmem:[%s2614_s4] sm:$0xff]  ;;  %v1841_v12 = vld [vmem:[%s2620_s26 + $0x38] sm:$0xff]  ;;  %s2838_s18 = sld [smem:[#allocation38_spill]]  ;;  %s759_s10 = scalar_lea.vmem [#allocation16], %s1629_s21 }
  0xd1   : > { %851 = vmatpush.bf16.msra.mxu0 %v1824_v2  ;;  %917 = vmatpush.bf16.msra.mxu1 %v1832_v3  ;;  %v1840_v13 = vld [vmem:[%s2620_s26 + $0x30] sm:$0xff]  ;;  %v1839_v15 = vld [vmem:[%s2620_s26 + $0x28] sm:$0xff]  ;;  %v1838_v16 = vld [vmem:[%s2620_s26 + $0x20] sm:$0xff]  ;;  %s1333_s8 = sshll.u32 %s759_s10, 4  ;;  %s1334_s8 = int_to_ptr.vmem [resolvable:$true] %s1333_s8 }
  0xd2   : > { %s762_s14 = scalar_lea.vmem %s2833_s29, %s2654_s6  ;;  %992 = vmatpush.bf16.msra.mxu2 %v1841_v12  ;;  %v1837_v22 = vld [vmem:[%s2620_s26 + $0x18] sm:$0xff]  ;;  %v1836_v23 = vld [vmem:[%s2620_s26 + $0x10] sm:$0xff]  ;;  %v1835_v24 = vld [vmem:[%s2620_s26 + $0x8] sm:$0xff] }
  0xd3   : > { %v1834_v25 = vld [vmem:[%s2620_s26] sm:$0xff]  ;;  %v1949_v27 = vld [vmem:[%s762_s14] ss:$0 sm:$0xff]  ;;  %v1848_v48 = vld [vmem:[%s2622_s15 + $0x30] sm:$0xff]  ;;  %s768_s4 = scalar_lea.vmem %s2835_s3, %s2654_s6 }
  0xd4   : > { %1646 = vmatmul.msk.bf16.vlgmr.msra.gmra.mxu0 %vm837_vm0, %v2640_v4  ;;  %v1849_v45 = vld [vmem:[%s2622_s15 + $0x38] sm:$0xff]  ;;  %v1847_v54 = vld [vmem:[%s2622_s15 + $0x28] sm:$0xff]  ;;  %v1846_v58 = vld [vmem:[%s2622_s15 + $0x20] sm:$0xff] }
  0xd5   : > { %918 = vmatpush.bf16.msra.mxu1 %v1831_v5  ;;  %s765_s1 = scalar_lea.vmem %s2834_s27, %s2654_s6  ;;  %1123 = vmatpush.bf16.msrb.mxu0 %v1849_v45  ;;  %v1845_v60 = vld [vmem:[%s2622_s15 + $0x18] sm:$0xff]  ;;  %v1844_v61 = vld [vmem:[%s2622_s15 + $0x10] sm:$0xff]  ;;  %v1843_v62 = vld [vmem:[%s2622_s15 + $0x8] sm:$0xff] }
  0xd6   : > { %993 = vmatpush.bf16.msra.mxu2 %v1840_v13  ;;  %v1950_v44 = vld [vmem:[%s765_s1] ss:$0 sm:$0xff]  ;;  %v1842_v63 = vld [vmem:[%s2622_s15] sm:$0xff]  ;;  %v1856_v1 = vld [vmem:[%s2628_s30 + $0x30] sm:$0xff]  ;;  %s2836_s15 = sld [smem:[#allocation37_spill]]  ;;  %s1331_s28 = scalar_lea.hbm %s2838_s18, %s1812_s12 }
  0xd7   : > { %v1857_v0 = vld [vmem:[%s2628_s30 + $0x38] sm:$0xff]  ;;  %v1855_v3 = vld [vmem:[%s2628_s30 + $0x28] sm:$0xff]  ;;  %v1850_v13 = vld [vmem:[%s2628_s30] sm:$0xff] }
  0xd8   : > { %v1851_v12 = vld [vmem:[%s2628_s30 + $0x8] sm:$0xff] }
  0xd9   : > { %919 = vmatpush.bf16.msra.mxu1 %v1830_v6  ;;  %1124 = vmatpush.bf16.msrb.mxu0 %v1848_v48 }
  0xda   : > { %994 = vmatpush.bf16.msra.mxu2 %v1839_v15  ;;  %v1951_v15 = vld [vmem:[%s768_s4] ss:$0 sm:$0xff]  ;;  %s1335_s4 = sshll.u32 %s1331_s28, 4  ;;  %s1336_s4 = int_to_ptr.hbm [resolvable:$true] %s1335_s4 }
  0xdc   : > { %s771_s25 = scalar_lea.vmem %s2836_s15, %s2654_s6 }
  0xdd   : > { %920 = vmatpush.bf16.msra.mxu1 %v1829_v7  ;;  %1125 = vmatpush.bf16.msrb.mxu0 %v1847_v54 }
  0xde   : > { %995 = vmatpush.bf16.msra.mxu2 %v1838_v16 }
  0xe1   : > { %921 = vmatpush.bf16.msra.mxu1 %v1828_v9  ;;  %1126 = vmatpush.bf16.msrb.mxu0 %v1846_v58 }
  0xe2   : > { %996 = vmatpush.bf16.msra.mxu2 %v1837_v22 }
  0xe4   : > { %1647 = vmatmul.msk.bf16.gmra.mxu0 %vm837_vm0, %v2648_v8 }
  0xe5   : > { %922 = vmatpush.bf16.msra.mxu1 %v1827_v10  ;;  %1127 = vmatpush.bf16.msrb.mxu0 %v1845_v60  ;;  %v1853_v10 = vld [vmem:[%s2628_s30 + $0x18] sm:$0xff] }
  0xe6   : > { %997 = vmatpush.bf16.msra.mxu2 %v1836_v23 }
  0xe9   : > { %923 = vmatpush.bf16.msra.mxu1 %v1826_v11  ;;  %1128 = vmatpush.bf16.msrb.mxu0 %v1844_v61  ;;  %v1852_v11 = vld [vmem:[%s2628_s30 + $0x10] sm:$0xff] }
  0xea   : > { %998 = vmatpush.bf16.msra.mxu2 %v1835_v24 }
  0xed   : > { %1129 = vmatpush.bf16.msrb.mxu0 %v1843_v62 }
  0xee   : > { %999 = vmatpush.bf16.msra.mxu2 %v1834_v25 }
  0xf1   : > { %1130 = vmatpush.bf16.msrb.mxu0 %v1842_v63 }
 0x151   : > { %v853_v14 = vpop.f32.mrf.mxu0 }
 0x159   : > { %v855_v17 = vpop.f32.mrf.mxu0 }
 0x15a   : > { %v863_v18 = vpack.c.bf16 %v855_v17, %v853_v14 }
 0x15c   : > { %924 = vmatmul.bf16.vlgmr.msra.gmra.mxu1 %v863_v18 }
 0x161   : > { %v858_v19 = vpop.f32.mrf.mxu0 }
 0x169   : > { %v860_v20 = vpop.f32.mrf.mxu0 }
 0x16a   : > { %v864_v21 = vpack.c.bf16 %v860_v20, %v858_v19 }
 0x16c   : > { %929 = vmatmul.bf16.gmra.mxu1 %v864_v21 }
 0x1d9   : > { %v925_v26 = vpop.f32.mrf.mxu1 }
 0x1da   : > { %v926_v28 = vadd.f32 %v1949_v27, %v925_v26 }
 0x1dc   : > { %v935_v31 = vmax.f32 %v926_v28, 0.0 }
 0x1e1   : > { %v927_v29 = vpop.f32.mrf.mxu1 }
 0x1e2   : > { %v928_v30 = vadd.f32 %v1949_v27, %v927_v29 }
 0x1e4   : > { %v936_v32 = vmax.f32 %v928_v30, 0.0  ;;  %v1865_v30 = vld [vmem:[%s2631_s20 + $0x38] sm:$0xff] }
 0x1e5   : > { %1306 = vmatpush.bf16.msrb.mxu2 %v1865_v30 }
 0x1e6   : > { %v939_v33 = vpack.c.bf16 %v936_v32, %v935_v31  ;;  %v1864_v32 = vld [vmem:[%s2631_s20 + $0x30] sm:$0xff] }
 0x1e8   : > { %1000 = vmatmul.bf16.vlgmr.msra.gmra.mxu2 %v939_v33  ;;  %v1863_v33 = vld [vmem:[%s2631_s20 + $0x28] sm:$0xff] }
 0x1e9   : > { %v930_v34 = vpop.f32.mrf.mxu1  ;;  %1307 = vmatpush.bf16.msrb.mxu2 %v1864_v32 }
 0x1ea   : > { %v931_v35 = vadd.f32 %v1949_v27, %v930_v34 }
 0x1ec   : > { %v937_v38 = vmax.f32 %v931_v35, 0.0  ;;  %v1862_v35 = vld [vmem:[%s2631_s20 + $0x20] sm:$0xff] }
 0x1ed   : > { %1308 = vmatpush.bf16.msrb.mxu2 %v1863_v33 }
 0x1f1   : > { %v932_v36 = vpop.f32.mrf.mxu1  ;;  %1309 = vmatpush.bf16.msrb.mxu2 %v1862_v35 }
 0x1f2   : > { %v933_v37 = vadd.f32 %v1949_v27, %v932_v36  ;;  %v1861_v36 = vld [vmem:[%s2631_s20 + $0x18] sm:$0xff] }
 0x1f4   : > { %v938_v39 = vmax.f32 %v933_v37, 0.0  ;;  %v1952_v37 = vld [vmem:[%s771_s25] ss:$0 sm:$0xff]  ;;  %s2213_s25 = scalar_lea.hbm %s2838_s18, 16 }
 0x1f5   : > { %1310 = vmatpush.bf16.msrb.mxu2 %v1861_v36 }
 0x1f6   : > { %v940_v40 = vpack.c.bf16 %v938_v39, %v937_v38 }
 0x1f8   : > { %1005 = vmatmul.bf16.gmra.mxu2 %v940_v40  ;;  %v1860_v40 = vld [vmem:[%s2631_s20 + $0x10] sm:$0xff] }
 0x1f9   : > { %1311 = vmatpush.bf16.msrb.mxu2 %v1860_v40 }
 0x26b   : > { %v1001_v41 = vpop.f32.mrf.mxu2 }
 0x26c   : > { %v1002_v51 = vadd.f32 %v1950_v44, %v1001_v41 }
 0x26e   : > { %v1011_v57 = vmax.f32 %v1002_v51, 0.0  ;;  %v1224_v51 = vld [vmem:[%s2612_s23] sm:$0xf]  ;;  %s1321_s23 = scalar_lea.sflag [#allocation4], %s2595_s16 }
 0x273   : > { %v1003_v42 = vpop.f32.mrf.mxu2 }
 0x274   : > { %v1004_v49 = vadd.f32 %v1950_v44, %v1003_v42 }
 0x276   : > { %v1012_v55 = vmax.f32 %v1004_v49, 0.0 }
 0x278   : > { %v1015_v59 = vpack.c.bf16 %v1012_v55, %v1011_v57 }
 0x27b   : > { %v1006_v43 = vpop.f32.mrf.mxu2 }
 0x27c   : > { %v1007_v46 = vadd.f32 %v1950_v44, %v1006_v43 }
 0x27e   : > { %v1013_v52 = vmax.f32 %v1007_v46, 0.0  ;;  %v1859_v46 = vld [vmem:[%s2631_s20 + $0x8] sm:$0xff] }
 0x27f   : > { %1312 = vmatpush.bf16.msrb.mxu2 %v1859_v46 }
 0x283   : > { %v1008_v47 = vpop.f32.mrf.mxu2 }
 0x284   : > { %v1009_v50 = vadd.f32 %v1950_v44, %v1008_v47 }
 0x286   : > { %v1014_v53 = vmax.f32 %v1009_v50, 0.0 }
 0x288   : > { %v1016_v56 = vpack.c.bf16 %v1014_v53, %v1013_v52  ;;  %v1858_v52 = vld [vmem:[%s2631_s20] sm:$0xff]  ;;  %s2207_s20 = sshra.s32 %s1336_s4, 4  ;;  %s2208_s20 = int_to_ptr.hbm [resolvable:$true] %s2207_s20 }
 0x289   : > { %1313 = vmatpush.bf16.msrb.mxu2 %v1858_v52  ;;  %s2209_s26 = scalar_lea.hbm %s2208_s20, 8  ;;  %p2214_p4 = scmp.lt.s32.totalorder %s2208_s20, %s2838_s18 }
 0x28a   : > { %1057 = vmatpush.bf16.msra.mxu3 %v1016_v56  ;;  %p2210_p13 = scmp.ne.s32.totalorder %s2208_s20, %s2209_s26  ;;  %p2215_p5 = scmp.lt.s32.totalorder %s2213_s25, %s2209_s26 }
 0x28c   : > { %p2211_p2 = pnand %p2210_p13, %p2390_p11  ;;  %p2216_p0 = por %p2215_p5, %p2214_p4 }
 0x28e   : > { %1058 = vmatpush.bf16.msra.mxu3 %v1015_v59  ;;  %p2212_p3 = pneg %p2211_p2 }
 0x290   : > { %p2217_p7 = pnand %p2216_p0, %p2212_p3 }
 0x291   : > { %1712 = vmatmul.msk.bf16.vlgmr.msra.gmra.mxu3 %vm837_vm0, %v2640_v4  ;;  %v1854_v4 = vld [vmem:[%s2628_s30 + $0x20] sm:$0xff] }
 0x292   : > { %1199 = vmatpush.bf16.msrb.mxu3 %v1857_v0 }
 0x296   : > { %1200 = vmatpush.bf16.msrb.mxu3 %v1856_v1 }
 0x29a   : > { %1201 = vmatpush.bf16.msrb.mxu3 %v1855_v3 }
 0x29e   : > { %1202 = vmatpush.bf16.msrb.mxu3 %v1854_v4 }
 0x2a1   : > { %1713 = vmatmul.msk.bf16.gmra.mxu3 %vm837_vm0, %v2648_v8 }
 0x2a2   : > { %1203 = vmatpush.bf16.msrb.mxu3 %v1853_v10 }
 0x2a6   : > { %1204 = vmatpush.bf16.msrb.mxu3 %v1852_v11 }
 0x2aa   : > { %1205 = vmatpush.bf16.msrb.mxu3 %v1851_v12 }
 0x2ae   : > { %1206 = vmatpush.bf16.msrb.mxu3 %v1850_v13 }
 0x314   : > { %v1060_v2 = vpop.f32.mrf.mxu3 }
 0x31c   : > { %v1062_v5 = vpop.f32.mrf.mxu3 }
 0x31d   : > { %v1070_v6 = vpack.c.bf16 %v1062_v5, %v1060_v2 }
 0x31f   : > { %1131 = vmatmul.bf16.vlgmr.msrb.gmra.mxu0 %v1070_v6 }
 0x324   : > { %v1065_v7 = vpop.f32.mrf.mxu3 }
 0x32c   : > { %v1067_v8 = vpop.f32.mrf.mxu3 }
 0x32d   : > { %v1071_v9 = vpack.c.bf16 %v1067_v8, %v1065_v7 }
 0x32f   : > { %1136 = vmatmul.bf16.gmra.mxu0 %v1071_v9 }
 0x39c   : > { %v1132_v14 = vpop.f32.mrf.mxu0 }
 0x39d   : > { %v1133_v16 = vadd.f32 %v1951_v15, %v1132_v14 }
 0x39f   : > { %v1142_v19 = vmax.f32 %v1133_v16, 0.0 }
 0x3a4   : > { %v1134_v17 = vpop.f32.mrf.mxu0 }
 0x3a5   : > { %v1135_v18 = vadd.f32 %v1951_v15, %v1134_v17 }
 0x3a7   : > { %v1143_v20 = vmax.f32 %v1135_v18, 0.0 }
 0x3a9   : > { %v1146_v21 = vpack.c.bf16 %v1143_v20, %v1142_v19 }
 0x3ab   : > { %1207 = vmatmul.bf16.vlgmr.msrb.gmra.mxu3 %v1146_v21 }
 0x3ac   : > { %v1137_v22 = vpop.f32.mrf.mxu0 }
 0x3ad   : > { %v1138_v23 = vadd.f32 %v1951_v15, %v1137_v22 }
 0x3af   : > { %v1144_v26 = vmax.f32 %v1138_v23, 0.0 }
 0x3b4   : > { %v1139_v24 = vpop.f32.mrf.mxu0 }
 0x3b5   : > { %v1140_v25 = vadd.f32 %v1951_v15, %v1139_v24 }
 0x3b7   : > { %v1145_v27 = vmax.f32 %v1140_v25, 0.0 }
 0x3b9   : > { %v1147_v28 = vpack.c.bf16 %v1145_v27, %v1144_v26 }
 0x3bb   : > { %1212 = vmatmul.bf16.gmra.mxu3 %v1147_v28 }
 0x42e   : > { %v1208_v29 = vpop.f32.mrf.mxu3 }
 0x42f   : > { %v1209_v43 = vadd.f32 %v1952_v37, %v1208_v29 }
 0x431   : > { %v1218_v49 = vmax.f32 %v1209_v43, 0.0 }
 0x436   : > { %v1210_v31 = vpop.f32.mrf.mxu3 }
 0x437   : > { %v1211_v41 = vadd.f32 %v1952_v37, %v1210_v31 }
 0x439   : > { %v1219_v47 = vmax.f32 %v1211_v41, 0.0 }
 0x43b   : > { %v1222_v50 = vpack.c.bf16 %v1219_v47, %v1218_v49 }
 0x43e   : > { %v1213_v34 = vpop.f32.mrf.mxu3 }
 0x43f   : > { %v1214_v38 = vadd.f32 %v1952_v37, %v1213_v34 }
 0x441   : > { %v1220_v44 = vmax.f32 %v1214_v38, 0.0 }
 0x446   : > { %v1215_v39 = vpop.f32.mrf.mxu3 }
 0x447   : > { %v1216_v42 = vadd.f32 %v1952_v37, %v1215_v39 }
 0x449   : > { %v1221_v45 = vmax.f32 %v1216_v42, 0.0 }
 0x44b   : > { %v1223_v48 = vpack.c.bf16 %v1221_v45, %v1220_v44 }
 0x44d   : > { %1234 = vmatpush.bf16.msrb.mxu1 %v1223_v48 }
 0x451   : > { %1235 = vmatpush.bf16.msrb.mxu1 %v1222_v50 }
 0x454   : > { %1778 = vmatmul.msk.bf16.vlgmr.msrb.gmra.mxu1 %vm837_vm0, %v1224_v51 }
 0x4d1   : > { %v1237_v53 = vpop.f32.mrf.mxu1 }
 0x4d2   : > { %v1241_v54 = vpack.c.bf16 %v1237_v53, %v1237_v53 }
 0x4d4   : > { %1314 = vmatmul.bf16.vlgmr.msrb.gmra.mxu2 %v1241_v54 }
 0x4d9   : > { %v1239_v55 = vpop.f32.mrf.mxu1 }
 0x557   : > { %v1315_v56 = vpop.f32.mrf.mxu2 }
 0x558   : > { %1319 = vst [vmem:[%s759_s10] sm:$0xff] %v1315_v56 }
 0x559   : > { %2220 = shalt.err (!%p2217_p7)
}
 0x55a   : > { %1882 = dma.vmem_to_hbm [thread:$0]  (%p2390_p11), %s1334_s8, 128, %s1336_s4, %s1321_s23  }
 0x55f   : > { %v1317_v57 = vpop.f32.mrf.mxu2 }
 0x560 PF: > { %s2839_s16 = sld [smem:[#allocation23_spill]]  ;;  %p1910_p8 = pnand %p1596_p9, %p2394_p12 }
 0x562   : > { %p1911_p10 = pneg %p1910_p8 }
 0x566   : > { %s1347_s14 = sand.u32 1, %s2839_s16  }
 0x567   : > { %s1348_s12 = scalar_lea.sflag [#allocation4], %s1347_s14 }
 0x568   : > { %2258 = dma.done.wait (%p1911_p10), %s1348_s12, 128  }
 0x569   : > { %2260 = vsyncadd (%p1911_p10), %s1348_s12, 4294967168  ;;  %s2841_s24 = sld [smem:[#allocation26_spill]]  ;;  %s2844_s21 = smov %s2267_s22 }
 0x56a   : > { %s2842_s27 = sld [smem:[#allocation24_spill]] }
 0x56b   : > { %s2843_s23 = sld [smem:[#allocation27_spill]] }
 0x56f   : > { %p37_p1 = scmp.ge.s32.totalorder %s2841_s24, 4  }
 0x570   : > { %s2845_s22 = smov %s2842_s27 }
 0x571   :  { %39 = sbr.rel (!%p37_p1) target bundleno = 22 (0x16), region = 210 }
 0x576   :  { %1354 = vsyncpa [#allocation3], 1 }
 0x577   :  { %1356 = vsyncpa [#allocation3 + $0x1], 1 }
 0x578   :  { %1357 = vsyncpa [#allocation6], 1 }
 0x579   :  { %1359 = vsyncpa [#allocation6 + $0x1], 1 }
 0x57a   :  { %1360 = vsyncpa [#allocation9], 1 }
 0x57b   :  { %1362 = vsyncpa [#allocation9 + $0x1], 1 }
 0x57c   :  { %1363 = vsyncpa [#allocation12], 1 }
 0x57d   :  { %1365 = vsyncpa [#allocation12 + $0x1], 1 }
 0x57e   :  { %1366 = vsyncpa [#allocation15], 1 }
 0x57f   :  { %1368 = vsyncpa [#allocation15 + $0x1], 1 }
 0x580   :  { %1369 = vsyncpa [#allocation4], 1 }
 0x581   :  { %1371 = vsyncpa [#allocation4 + $0x1], 1 }

</bundles_post_ra>
